<compile_context>
chip_gen: v6e
topology: v6e:2x2x1
jax: 0.10.0
libtpu: 0.0.40
codegen_flags: <defaults>
</compile_context>

<pallas_src>
import numpy as np
import jax
import jax.numpy as jnp
from jax.experimental import pallas as pl
from jax.experimental.pallas import tpu as pltpu


def _round_up(v, m):
    return (v + m - 1) // m * m


def conv2d_gru_cell(x, hx, wx, wh, bx, bh, kernel_size,
                    compute_dtype=jnp.bfloat16,
                    hx_padded=False, crop_output=True, s_chunk=512):
    """Pallas forward of Conv2dGRUCell.

    x : (B, Cin, H, W)                 NCHW (PyTorch convention)
    hx: (B, hid, H, W), or the padded-flat (B, hid, S_out) layout returned by
        a previous call with crop_output=False (set hx_padded=True), or None
    wx: (3*hid, Cin, kh, kw)           OIHW (PyTorch Conv2d weight)
    wh: (3*hid, hid, kh, kw)           OIHW
    bx, bh: (3*hid,)
    Returns (B, hid, H, W) if crop_output else the padded-flat (B, hid, S_out)
    layout (valid value for pixel (h, w) at column h*Wp + w), which can be
    fed straight back in as hx so a rollout never pays the crop.
    """
    kh, kw = kernel_size
    assert kh % 2 == 1 and kw % 2 == 1, "Conv2dGRUCell requires odd kernel sizes"
    ph, pw = kh // 2, kw // 2

    B, Cin, H, W = x.shape
    c3 = bx.shape[0]
    hid = c3 // 3
    c6 = 2 * c3
    f32 = jnp.float32

    Hp, Wp = H + 2 * ph, W + 2 * pw
    Cin_p = _round_up(Cin, 8)             # x channel rows, sublane aligned
    Ccp = _round_up(Cin_p + hid, 8)       # [x ; h] channel rows in the scratch

    # Lane geometry: output columns live on the flattened padded grid.
    S_core = Hp * Wp
    chunk = min(_round_up(int(s_chunk), 128), _round_up(S_core, 128))
    n_chunks = (_round_up(S_core, 128) + chunk - 1) // chunk
    S_out = n_chunks * chunk
    halo = (kh - 1) * Wp + (kw - 1)
    S_in = _round_up(S_out + halo, 128)

    # ---- activations: free reshapes only, no concat / pad / cast in HBM.
    x_flat = x.reshape(B, Cin, H * W)
    if hx is None:
        hx_padded = False
        hx = jnp.zeros((B, hid, H * W), x.dtype)
    hx = hx.reshape(B, hid, -1)
    if hx_padded:
        assert hx.shape[2] >= (H - 1) * Wp + W, "padded hx layout too short"
    else:
        assert hx.shape[2] == H * W
    S_hx = hx.shape[2]
    hx_stride = Wp if hx_padded else W

    # ---- per-tap fused weights (kh*kw, 6*hid, Ccp): rows 0:3h -> x2h,
    # 3h:6h -> h2h; x channels in cols [0, Cin), h channels in
    # [Cin_p, Cin_p + hid), the rest zero (matching the scratch layout).
    wx_t = jnp.transpose(wx, (2, 3, 0, 1)).reshape(kh * kw, c3, Cin).astype(f32)
    wh_t = jnp.transpose(wh, (2, 3, 0, 1)).reshape(kh * kw, c3, hid).astype(f32)
    w_taps = jnp.zeros((kh * kw, c6, Ccp), f32)
    w_taps = w_taps.at[:, :c3, :Cin].set(wx_t)
    w_taps = w_taps.at[:, c3:, Cin_p:Cin_p + hid].set(wh_t)
    w_taps = w_taps.astype(compute_dtype)
    b_all = jnp.concatenate([bx, bh]).astype(f32).reshape(c6, 1)

    s_center = ph * Wp + pw
    out_dtype = x.dtype

    def kernel(x_ref, hx_ref, w_ref, b_ref, o_ref, xh_ref):
        # 1) Build the zero-padded [x ; h] image once per batch block in an
        #    f32 VMEM scratch, flattened so the padded spatial grid is the
        #    lane axis.  (f32 keeps the state carry exact in bf16 mode.)
        xh_ref[...] = jnp.zeros_like(xh_ref)
        for h in range(H):
            dst = (h + ph) * Wp + pw
            xh_ref[0:Cin, dst:dst + W] = (
                x_ref[0, :, h * W:h * W + W].astype(jnp.float32))
            src = h * hx_stride
            xh_ref[Cin_p:Cin_p + hid, dst:dst + W] = (
                hx_ref[0, :, src:src + W].astype(jnp.float32))

        bias = b_ref[...]

        # 2) Conv + gates, chunked over lanes to bound the live f32 set.
        for c in range(n_chunks):
            c0 = c * chunk
            acc = jnp.zeros((c6, chunk), jnp.float32)
            for dy in range(kh):
                for dx in range(kw):
                    t = dy * kw + dx
                    s = c0 + dy * Wp + dx
                    win = xh_ref[:, s:s + chunk].astype(compute_dtype)
                    acc = acc + jnp.dot(w_ref[t], win,
                                        preferred_element_type=jnp.float32)
            gates = acc + bias

            x_r = gates[0:hid]
            x_u = gates[hid:2 * hid]
            x_n = gates[2 * hid:c3]
            h_r = gates[c3:c3 + hid]
            h_u = gates[c3 + hid:c3 + 2 * hid]
            h_n = gates[c3 + 2 * hid:c6]

            reset_gate = jax.nn.sigmoid(x_r + h_r)
            update_gate = jax.nn.sigmoid(x_u + h_u)
            new_gate = jnp.tanh(x_n + reset_gate * h_n)

            # Exact f32 previous hidden state at the centre tap.
            hx_c = xh_ref[Cin_p:Cin_p + hid,
                          c0 + s_center:c0 + s_center + chunk]
            o_ref[0, :, c0:c0 + chunk] = (
                update_gate * hx_c + (1.0 - update_gate) * new_gate
            ).astype(out_dtype)

    # Explicit VMEM budget from the actual blocks (double-buffered in/out,
    # weights, scratch, live f32 temporaries) with margin.
    isz = jnp.dtype(x.dtype).itemsize
    csz = jnp.dtype(compute_dtype).itemsize
    vmem_bytes = (
        2 * _round_up(Cin, 8) * H * W * isz
        + 2 * _round_up(hid, 8) * S_hx * jnp.dtype(hx.dtype).itemsize
        + 2 * _round_up(hid, 8) * S_out * jnp.dtype(out_dtype).itemsize
        + 2 * (kh * kw * c6 * max(Ccp, 128) * csz + c6 * 128 * 4)
        + Ccp * S_in * 4
        + (c6 + Ccp + 6 * hid) * chunk * 4)
    vmem_limit = int(max(32 << 20, min(vmem_bytes * 3 // 2 + (2 << 20),
                                       100 << 20)))

    out_flat = pl.pallas_call(
        kernel,
        out_shape=jax.ShapeDtypeStruct((B, hid, S_out), out_dtype),
        grid=(B,),
        in_specs=[
            pl.BlockSpec((1, Cin, H * W), lambda b: (b, 0, 0)),
            pl.BlockSpec((1, hid, S_hx), lambda b: (b, 0, 0)),
            pl.BlockSpec((kh * kw, c6, Ccp), lambda b: (0, 0, 0)),
            pl.BlockSpec((c6, 1), lambda b: (0, 0)),
        ],
        out_specs=pl.BlockSpec((1, hid, S_out), lambda b: (b, 0, 0)),
        scratch_shapes=[pltpu.VMEM((Ccp, S_in), jnp.float32)],
        compiler_params=pltpu.CompilerParams(
            dimension_semantics=("parallel",),
            vmem_limit_bytes=vmem_limit),
    )(x_flat, hx, w_taps, b_all)

    if not crop_output:
        return out_flat
    # Single crop back to (B, hid, H, W); a recurrent rollout should instead
    # use crop_output=False + hx_padded=True so this HBM pass is paid once.
    return out_flat[:, :, :S_core].reshape(B, hid, Hp, Wp)[:, :, :H, :W]


def _reference(x, hx, wx, wh, bx, bh, kh, kw):
    """Pure-JAX reference matching the PyTorch forward (NCHW)."""
    ph, pw = kh // 2, kw // 2
    dn = jax.lax.conv_dimension_numbers(x.shape, wx.shape,
                                        ("NCHW", "OIHW", "NCHW"))
    x_t = jax.lax.conv_general_dilated(
        x, wx, (1, 1), ((ph, ph), (pw, pw)), dimension_numbers=dn,
        precision=jax.lax.Precision.HIGHEST) + bx[None, :, None, None]
    h_t = jax.lax.conv_general_dilated(
        hx, wh, (1, 1), ((ph, ph), (pw, pw)), dimension_numbers=dn,
        precision=jax.lax.Precision.HIGHEST) + bh[None, :, None, None]
    x_reset, x_upd, x_new = jnp.split(x_t, 3, axis=1)
    h_reset, h_upd, h_new = jnp.split(h_t, 3, axis=1)
    reset_gate = jax.nn.sigmoid(x_reset + h_reset)
    update_gate = jax.nn.sigmoid(x_upd + h_upd)
    new_gate = jnp.tanh(x_new + reset_gate * h_new)
    return update_gate * hx + (1.0 - update_gate) * new_gate


if __name__ == "__main__":
    # Small shapes consistent with the module's forward.
    B, Cin, H, W = 2, 4, 16, 16
    hidden = 8
    k = 3  # kernel_size -> (3, 3), padding (1, 1)

    key = jax.random.PRNGKey(0)
    k_x, k_h, k_wx, k_wh, k_bx, k_bh, k_x2 = jax.random.split(key, 7)

    # Deterministic parameter init mirroring reset_parameters():
    # uniform(-1/sqrt(hidden), 1/sqrt(hidden)) for all weights/biases.
    std = 1.0 / np.sqrt(hidden)
    wx = jax.random.uniform(k_wx, (3 * hidden, Cin, k, k), jnp.float32, -std, std)
    wh = jax.random.uniform(k_wh, (3 * hidden, hidden, k, k), jnp.float32, -std, std)
    bx = jax.random.uniform(k_bx, (3 * hidden,), jnp.float32, -std, std)
    bh = jax.random.uniform(k_bh, (3 * hidden,), jnp.float32, -std, std)

    x1 = jax.random.normal(k_x, (B, Cin, H, W), jnp.float32)
    hx0 = jax.random.normal(k_h, (B, hidden, H, W), jnp.float32)
    x2 = jax.random.normal(k_x2, (B, Cin, H, W), jnp.float32)

    ref1 = _reference(x1, hx0, wx, wh, bx, bh, k, k)
    ref2 = _reference(x2, ref1, wx, wh, bx, bh, k, k)

    # 1) f32 compute path, default cropped output.
    hy_f32 = jax.block_until_ready(
        conv2d_gru_cell(x1, hx0, wx, wh, bx, bh, (k, k),
                        compute_dtype=jnp.float32))
    if not np.allclose(np.asarray(hy_f32), np.asarray(ref1), atol=5e-3, rtol=5e-3):
        raise AssertionError("Pallas Conv2dGRUCell (f32) mismatch vs reference")

    # 2) Default bf16 matmul path (f32 accumulation, gate math & state carry).
    hy_bf16 = jax.block_until_ready(
        conv2d_gru_cell(x1, hx0, wx, wh, bx, bh, (k, k)))
    if not np.allclose(np.asarray(hy_bf16), np.asarray(ref1), atol=3e-2, rtol=3e-2):
        raise AssertionError("Pallas Conv2dGRUCell (bf16) mismatch vs reference")

    # 3) Crop-free recurrent rollout: step-1 output stays in the padded-flat
    #    layout and is consumed directly by step 2; crop only at the end.
    h1_pad = conv2d_gru_cell(x1, hx0, wx, wh, bx, bh, (k, k),
                             compute_dtype=jnp.float32, crop_output=False)
    hy2 = jax.block_until_ready(
        conv2d_gru_cell(x2, h1_pad, wx, wh, bx, bh, (k, k),
                        compute_dtype=jnp.float32, hx_padded=True))
    if not np.allclose(np.asarray(hy2), np.asarray(ref2), atol=1e-2, rtol=1e-2):
        raise AssertionError("Pallas Conv2dGRUCell rollout mismatch vs reference")

    print("KERNEL_OK")
</pallas_src>

<mosaic_0001>
module attributes {stable_mosaic.version = 11 : i64} {
  func.func @kernel(%arg0: i32, %arg1: memref<1x4x256xf32, #tpu.memory_space<vmem>>, %arg2: memref<1x8x256xf32, #tpu.memory_space<vmem>>, %arg3: memref<9x48x16xf32, #tpu.memory_space<vmem>>, %arg4: memref<48x1xf32, #tpu.memory_space<vmem>>, %arg5: memref<1x8x384xf32, #tpu.memory_space<vmem>>, %arg6: memref<16x512xf32, #tpu.memory_space<vmem>>) attributes {dimension_semantics = [#tpu.dimension_semantics<parallel>], iteration_bounds = array<i64: 2>, scalar_prefetch = 0 : i64, scratch_operands = 1 : i64, tpu.core_type = #tpu.core_type<tc>, window_params = [{transform_indices = @transform_0, window_bounds = array<i64: 1, 4, 256>}, {transform_indices = @transform_1, window_bounds = array<i64: 1, 8, 256>}, {pipeline_mode = #tpu.pipeline_mode<synchronous>, transform_indices = @transform_2, window_bounds = array<i64: 9, 48, 16>}, {pipeline_mode = #tpu.pipeline_mode<synchronous>, transform_indices = @transform_3, window_bounds = array<i64: 48, 1>}, {transform_indices = @transform_4, window_bounds = array<i64: 1, 8, 384>}]} {
    %cst = arith.constant 0.000000e+00 : f32
    %0 = vector.broadcast %cst : f32 to vector<16x512xf32>
    %c0 = arith.constant 0 : index
    %c0_0 = arith.constant 0 : index
    %1 = vector.load %arg6[%c0, %c0_0] : memref<16x512xf32, #tpu.memory_space<vmem>>, vector<16x512xf32>
    tpu.vector_store %arg6[%c0, %c0_0], %0 {strides = array<i32>} : memref<16x512xf32, #tpu.memory_space<vmem>>, vector<16x512xf32>,
    %c0_1 = arith.constant 0 : index
    %c0_2 = arith.constant 0 : index
    %c0_3 = arith.constant 0 : index
    %2 = vector.load %arg1[%c0_1, %c0_2, %c0_3] : memref<1x4x256xf32, #tpu.memory_space<vmem>>, vector<1x4x16xf32>
    %3 = vector.shape_cast %2 : vector<1x4x16xf32> to vector<4x16xf32>
    %c0_4 = arith.constant 0 : index
    %c19 = arith.constant 19 : index
    %4 = vector.load %arg6[%c0_4, %c19] : memref<16x512xf32, #tpu.memory_space<vmem>>, vector<4x16xf32>
    tpu.vector_store %arg6[%c0_4, %c19], %3 {strides = array<i32>} : memref<16x512xf32, #tpu.memory_space<vmem>>, vector<4x16xf32>,
    %c0_5 = arith.constant 0 : index
    %c0_6 = arith.constant 0 : index
    %c0_7 = arith.constant 0 : index
    %5 = vector.load %arg2[%c0_5, %c0_6, %c0_7] : memref<1x8x256xf32, #tpu.memory_space<vmem>>, vector<1x8x16xf32>
    %6 = vector.shape_cast %5 : vector<1x8x16xf32> to vector<8x16xf32>
    %c8 = arith.constant 8 : index
    %c19_8 = arith.constant 19 : index
    %7 = vector.load %arg6[%c8, %c19_8] : memref<16x512xf32, #tpu.memory_space<vmem>>, vector<8x16xf32>
    tpu.vector_store %arg6[%c8, %c19_8], %6 {strides = array<i32>} : memref<16x512xf32, #tpu.memory_space<vmem>>, vector<8x16xf32>,
    %c0_9 = arith.constant 0 : index
    %c0_10 = arith.constant 0 : index
    %c16 = arith.constant 16 : index
    %8 = vector.load %arg1[%c0_9, %c0_10, %c16] : memref<1x4x256xf32, #tpu.memory_space<vmem>>, vector<1x4x16xf32>
    %9 = vector.shape_cast %8 : vector<1x4x16xf32> to vector<4x16xf32>
    %c0_11 = arith.constant 0 : index
    %c37 = arith.constant 37 : index
    %10 = vector.load %arg6[%c0_11, %c37] : memref<16x512xf32, #tpu.memory_space<vmem>>, vector<4x16xf32>
    tpu.vector_store %arg6[%c0_11, %c37], %9 {strides = array<i32>} : memref<16x512xf32, #tpu.memory_space<vmem>>, vector<4x16xf32>,
    %c0_12 = arith.constant 0 : index
    %c0_13 = arith.constant 0 : index
    %c16_14 = arith.constant 16 : index
    %11 = vector.load %arg2[%c0_12, %c0_13, %c16_14] : memref<1x8x256xf32, #tpu.memory_space<vmem>>, vector<1x8x16xf32>
    %12 = vector.shape_cast %11 : vector<1x8x16xf32> to vector<8x16xf32>
    %c8_15 = arith.constant 8 : index
    %c37_16 = arith.constant 37 : index
    %13 = vector.load %arg6[%c8_15, %c37_16] : memref<16x512xf32, #tpu.memory_space<vmem>>, vector<8x16xf32>
    tpu.vector_store %arg6[%c8_15, %c37_16], %12 {strides = array<i32>} : memref<16x512xf32, #tpu.memory_space<vmem>>, vector<8x16xf32>,
    %c0_17 = arith.constant 0 : index
    %c0_18 = arith.constant 0 : index
    %c32 = arith.constant 32 : index
    %14 = vector.load %arg1[%c0_17, %c0_18, %c32] : memref<1x4x256xf32, #tpu.memory_space<vmem>>, vector<1x4x16xf32>
    %15 = vector.shape_cast %14 : vector<1x4x16xf32> to vector<4x16xf32>
    %c0_19 = arith.constant 0 : index
    %c55 = arith.constant 55 : index
    %16 = vector.load %arg6[%c0_19, %c55] : memref<16x512xf32, #tpu.memory_space<vmem>>, vector<4x16xf32>
    tpu.vector_store %arg6[%c0_19, %c55], %15 {strides = array<i32>} : memref<16x512xf32, #tpu.memory_space<vmem>>, vector<4x16xf32>,
    %c0_20 = arith.constant 0 : index
    %c0_21 = arith.constant 0 : index
    %c32_22 = arith.constant 32 : index
    %17 = vector.load %arg2[%c0_20, %c0_21, %c32_22] : memref<1x8x256xf32, #tpu.memory_space<vmem>>, vector<1x8x16xf32>
    %18 = vector.shape_cast %17 : vector<1x8x16xf32> to vector<8x16xf32>
    %c8_23 = arith.constant 8 : index
    %c55_24 = arith.constant 55 : index
    %19 = vector.load %arg6[%c8_23, %c55_24] : memref<16x512xf32, #tpu.memory_space<vmem>>, vector<8x16xf32>
    tpu.vector_store %arg6[%c8_23, %c55_24], %18 {strides = array<i32>} : memref<16x512xf32, #tpu.memory_space<vmem>>, vector<8x16xf32>,
    %c0_25 = arith.constant 0 : index
    %c0_26 = arith.constant 0 : index
    %c48 = arith.constant 48 : index
    %20 = vector.load %arg1[%c0_25, %c0_26, %c48] : memref<1x4x256xf32, #tpu.memory_space<vmem>>, vector<1x4x16xf32>
    %21 = vector.shape_cast %20 : vector<1x4x16xf32> to vector<4x16xf32>
    %c0_27 = arith.constant 0 : index
    %c73 = arith.constant 73 : index
    %22 = vector.load %arg6[%c0_27, %c73] : memref<16x512xf32, #tpu.memory_space<vmem>>, vector<4x16xf32>
    tpu.vector_store %arg6[%c0_27, %c73], %21 {strides = array<i32>} : memref<16x512xf32, #tpu.memory_space<vmem>>, vector<4x16xf32>,
    %c0_28 = arith.constant 0 : index
    %c0_29 = arith.constant 0 : index
    %c48_30 = arith.constant 48 : index
    %23 = vector.load %arg2[%c0_28, %c0_29, %c48_30] : memref<1x8x256xf32, #tpu.memory_space<vmem>>, vector<1x8x16xf32>
    %24 = vector.shape_cast %23 : vector<1x8x16xf32> to vector<8x16xf32>
    %c8_31 = arith.constant 8 : index
    %c73_32 = arith.constant 73 : index
    %25 = vector.load %arg6[%c8_31, %c73_32] : memref<16x512xf32, #tpu.memory_space<vmem>>, vector<8x16xf32>
    tpu.vector_store %arg6[%c8_31, %c73_32], %24 {strides = array<i32>} : memref<16x512xf32, #tpu.memory_space<vmem>>, vector<8x16xf32>,
    %c0_33 = arith.constant 0 : index
    %c0_34 = arith.constant 0 : index
    %c64 = arith.constant 64 : index
    %26 = vector.load %arg1[%c0_33, %c0_34, %c64] : memref<1x4x256xf32, #tpu.memory_space<vmem>>, vector<1x4x16xf32>
    %27 = vector.shape_cast %26 : vector<1x4x16xf32> to vector<4x16xf32>
    %c0_35 = arith.constant 0 : index
    %c91 = arith.constant 91 : index
    %28 = vector.load %arg6[%c0_35, %c91] : memref<16x512xf32, #tpu.memory_space<vmem>>, vector<4x16xf32>
    tpu.vector_store %arg6[%c0_35, %c91], %27 {strides = array<i32>} : memref<16x512xf32, #tpu.memory_space<vmem>>, vector<4x16xf32>,
    %c0_36 = arith.constant 0 : index
    %c0_37 = arith.constant 0 : index
    %c64_38 = arith.constant 64 : index
    %29 = vector.load %arg2[%c0_36, %c0_37, %c64_38] : memref<1x8x256xf32, #tpu.memory_space<vmem>>, vector<1x8x16xf32>
    %30 = vector.shape_cast %29 : vector<1x8x16xf32> to vector<8x16xf32>
    %c8_39 = arith.constant 8 : index
    %c91_40 = arith.constant 91 : index
    %31 = vector.load %arg6[%c8_39, %c91_40] : memref<16x512xf32, #tpu.memory_space<vmem>>, vector<8x16xf32>
    tpu.vector_store %arg6[%c8_39, %c91_40], %30 {strides = array<i32>} : memref<16x512xf32, #tpu.memory_space<vmem>>, vector<8x16xf32>,
    %c0_41 = arith.constant 0 : index
    %c0_42 = arith.constant 0 : index
    %c80 = arith.constant 80 : index
    %32 = vector.load %arg1[%c0_41, %c0_42, %c80] : memref<1x4x256xf32, #tpu.memory_space<vmem>>, vector<1x4x16xf32>
    %33 = vector.shape_cast %32 : vector<1x4x16xf32> to vector<4x16xf32>
    %c0_43 = arith.constant 0 : index
    %c109 = arith.constant 109 : index
    %34 = vector.load %arg6[%c0_43, %c109] : memref<16x512xf32, #tpu.memory_space<vmem>>, vector<4x16xf32>
    tpu.vector_store %arg6[%c0_43, %c109], %33 {strides = array<i32>} : memref<16x512xf32, #tpu.memory_space<vmem>>, vector<4x16xf32>,
    %c0_44 = arith.constant 0 : index
    %c0_45 = arith.constant 0 : index
    %c80_46 = arith.constant 80 : index
    %35 = vector.load %arg2[%c0_44, %c0_45, %c80_46] : memref<1x8x256xf32, #tpu.memory_space<vmem>>, vector<1x8x16xf32>
    %36 = vector.shape_cast %35 : vector<1x8x16xf32> to vector<8x16xf32>
    %c8_47 = arith.constant 8 : index
    %c109_48 = arith.constant 109 : index
    %37 = vector.load %arg6[%c8_47, %c109_48] : memref<16x512xf32, #tpu.memory_space<vmem>>, vector<8x16xf32>
    tpu.vector_store %arg6[%c8_47, %c109_48], %36 {strides = array<i32>} : memref<16x512xf32, #tpu.memory_space<vmem>>, vector<8x16xf32>,
    %c0_49 = arith.constant 0 : index
    %c0_50 = arith.constant 0 : index
    %c96 = arith.constant 96 : index
    %38 = vector.load %arg1[%c0_49, %c0_50, %c96] : memref<1x4x256xf32, #tpu.memory_space<vmem>>, vector<1x4x16xf32>
    %39 = vector.shape_cast %38 : vector<1x4x16xf32> to vector<4x16xf32>
    %c0_51 = arith.constant 0 : index
    %c127 = arith.constant 127 : index
    %40 = vector.load %arg6[%c0_51, %c127] : memref<16x512xf32, #tpu.memory_space<vmem>>, vector<4x16xf32>
    tpu.vector_store %arg6[%c0_51, %c127], %39 {strides = array<i32>} : memref<16x512xf32, #tpu.memory_space<vmem>>, vector<4x16xf32>,
    %c0_52 = arith.constant 0 : index
    %c0_53 = arith.constant 0 : index
    %c96_54 = arith.constant 96 : index
    %41 = vector.load %arg2[%c0_52, %c0_53, %c96_54] : memref<1x8x256xf32, #tpu.memory_space<vmem>>, vector<1x8x16xf32>
    %42 = vector.shape_cast %41 : vector<1x8x16xf32> to vector<8x16xf32>
    %c8_55 = arith.constant 8 : index
    %c127_56 = arith.constant 127 : index
    %43 = vector.load %arg6[%c8_55, %c127_56] : memref<16x512xf32, #tpu.memory_space<vmem>>, vector<8x16xf32>
    tpu.vector_store %arg6[%c8_55, %c127_56], %42 {strides = array<i32>} : memref<16x512xf32, #tpu.memory_space<vmem>>, vector<8x16xf32>,
    %c0_57 = arith.constant 0 : index
    %c0_58 = arith.constant 0 : index
    %c112 = arith.constant 112 : index
    %44 = vector.load %arg1[%c0_57, %c0_58, %c112] : memref<1x4x256xf32, #tpu.memory_space<vmem>>, vector<1x4x16xf32>
    %45 = vector.shape_cast %44 : vector<1x4x16xf32> to vector<4x16xf32>
    %c0_59 = arith.constant 0 : index
    %c145 = arith.constant 145 : index
    %46 = vector.load %arg6[%c0_59, %c145] : memref<16x512xf32, #tpu.memory_space<vmem>>, vector<4x16xf32>
    tpu.vector_store %arg6[%c0_59, %c145], %45 {strides = array<i32>} : memref<16x512xf32, #tpu.memory_space<vmem>>, vector<4x16xf32>,
    %c0_60 = arith.constant 0 : index
    %c0_61 = arith.constant 0 : index
    %c112_62 = arith.constant 112 : index
    %47 = vector.load %arg2[%c0_60, %c0_61, %c112_62] : memref<1x8x256xf32, #tpu.memory_space<vmem>>, vector<1x8x16xf32>
    %48 = vector.shape_cast %47 : vector<1x8x16xf32> to vector<8x16xf32>
    %c8_63 = arith.constant 8 : index
    %c145_64 = arith.constant 145 : index
    %49 = vector.load %arg6[%c8_63, %c145_64] : memref<16x512xf32, #tpu.memory_space<vmem>>, vector<8x16xf32>
    tpu.vector_store %arg6[%c8_63, %c145_64], %48 {strides = array<i32>} : memref<16x512xf32, #tpu.memory_space<vmem>>, vector<8x16xf32>,
    %c0_65 = arith.constant 0 : index
    %c0_66 = arith.constant 0 : index
    %c128 = arith.constant 128 : index
    %50 = vector.load %arg1[%c0_65, %c0_66, %c128] : memref<1x4x256xf32, #tpu.memory_space<vmem>>, vector<1x4x16xf32>
    %51 = vector.shape_cast %50 : vector<1x4x16xf32> to vector<4x16xf32>
    %c0_67 = arith.constant 0 : index
    %c163 = arith.constant 163 : index
    %52 = vector.load %arg6[%c0_67, %c163] : memref<16x512xf32, #tpu.memory_space<vmem>>, vector<4x16xf32>
    tpu.vector_store %arg6[%c0_67, %c163], %51 {strides = array<i32>} : memref<16x512xf32, #tpu.memory_space<vmem>>, vector<4x16xf32>,
    %c0_68 = arith.constant 0 : index
    %c0_69 = arith.constant 0 : index
    %c128_70 = arith.constant 128 : index
    %53 = vector.load %arg2[%c0_68, %c0_69, %c128_70] : memref<1x8x256xf32, #tpu.memory_space<vmem>>, vector<1x8x16xf32>
    %54 = vector.shape_cast %53 : vector<1x8x16xf32> to vector<8x16xf32>
    %c8_71 = arith.constant 8 : index
    %c163_72 = arith.constant 163 : index
    %55 = vector.load %arg6[%c8_71, %c163_72] : memref<16x512xf32, #tpu.memory_space<vmem>>, vector<8x16xf32>
    tpu.vector_store %arg6[%c8_71, %c163_72], %54 {strides = array<i32>} : memref<16x512xf32, #tpu.memory_space<vmem>>, vector<8x16xf32>,
    %c0_73 = arith.constant 0 : index
    %c0_74 = arith.constant 0 : index
    %c144 = arith.constant 144 : index
    %56 = vector.load %arg1[%c0_73, %c0_74, %c144] : memref<1x4x256xf32, #tpu.memory_space<vmem>>, vector<1x4x16xf32>
    %57 = vector.shape_cast %56 : vector<1x4x16xf32> to vector<4x16xf32>
    %c0_75 = arith.constant 0 : index
    %c181 = arith.constant 181 : index
    %58 = vector.load %arg6[%c0_75, %c181] : memref<16x512xf32, #tpu.memory_space<vmem>>, vector<4x16xf32>
    tpu.vector_store %arg6[%c0_75, %c181], %57 {strides = array<i32>} : memref<16x512xf32, #tpu.memory_space<vmem>>, vector<4x16xf32>,
    %c0_76 = arith.constant 0 : index
    %c0_77 = arith.constant 0 : index
    %c144_78 = arith.constant 144 : index
    %59 = vector.load %arg2[%c0_76, %c0_77, %c144_78] : memref<1x8x256xf32, #tpu.memory_space<vmem>>, vector<1x8x16xf32>
    %60 = vector.shape_cast %59 : vector<1x8x16xf32> to vector<8x16xf32>
    %c8_79 = arith.constant 8 : index
    %c181_80 = arith.constant 181 : index
    %61 = vector.load %arg6[%c8_79, %c181_80] : memref<16x512xf32, #tpu.memory_space<vmem>>, vector<8x16xf32>
    tpu.vector_store %arg6[%c8_79, %c181_80], %60 {strides = array<i32>} : memref<16x512xf32, #tpu.memory_space<vmem>>, vector<8x16xf32>,
    %c0_81 = arith.constant 0 : index
    %c0_82 = arith.constant 0 : index
    %c160 = arith.constant 160 : index
    %62 = vector.load %arg1[%c0_81, %c0_82, %c160] : memref<1x4x256xf32, #tpu.memory_space<vmem>>, vector<1x4x16xf32>
    %63 = vector.shape_cast %62 : vector<1x4x16xf32> to vector<4x16xf32>
    %c0_83 = arith.constant 0 : index
    %c199 = arith.constant 199 : index
    %64 = vector.load %arg6[%c0_83, %c199] : memref<16x512xf32, #tpu.memory_space<vmem>>, vector<4x16xf32>
    tpu.vector_store %arg6[%c0_83, %c199], %63 {strides = array<i32>} : memref<16x512xf32, #tpu.memory_space<vmem>>, vector<4x16xf32>,
    %c0_84 = arith.constant 0 : index
    %c0_85 = arith.constant 0 : index
    %c160_86 = arith.constant 160 : index
    %65 = vector.load %arg2[%c0_84, %c0_85, %c160_86] : memref<1x8x256xf32, #tpu.memory_space<vmem>>, vector<1x8x16xf32>
    %66 = vector.shape_cast %65 : vector<1x8x16xf32> to vector<8x16xf32>
    %c8_87 = arith.constant 8 : index
    %c199_88 = arith.constant 199 : index
    %67 = vector.load %arg6[%c8_87, %c199_88] : memref<16x512xf32, #tpu.memory_space<vmem>>, vector<8x16xf32>
    tpu.vector_store %arg6[%c8_87, %c199_88], %66 {strides = array<i32>} : memref<16x512xf32, #tpu.memory_space<vmem>>, vector<8x16xf32>,
    %c0_89 = arith.constant 0 : index
    %c0_90 = arith.constant 0 : index
    %c176 = arith.constant 176 : index
    %68 = vector.load %arg1[%c0_89, %c0_90, %c176] : memref<1x4x256xf32, #tpu.memory_space<vmem>>, vector<1x4x16xf32>
    %69 = vector.shape_cast %68 : vector<1x4x16xf32> to vector<4x16xf32>
    %c0_91 = arith.constant 0 : index
    %c217 = arith.constant 217 : index
    %70 = vector.load %arg6[%c0_91, %c217] : memref<16x512xf32, #tpu.memory_space<vmem>>, vector<4x16xf32>
    tpu.vector_store %arg6[%c0_91, %c217], %69 {strides = array<i32>} : memref<16x512xf32, #tpu.memory_space<vmem>>, vector<4x16xf32>,
    %c0_92 = arith.constant 0 : index
    %c0_93 = arith.constant 0 : index
    %c176_94 = arith.constant 176 : index
    %71 = vector.load %arg2[%c0_92, %c0_93, %c176_94] : memref<1x8x256xf32, #tpu.memory_space<vmem>>, vector<1x8x16xf32>
    %72 = vector.shape_cast %71 : vector<1x8x16xf32> to vector<8x16xf32>
    %c8_95 = arith.constant 8 : index
    %c217_96 = arith.constant 217 : index
    %73 = vector.load %arg6[%c8_95, %c217_96] : memref<16x512xf32, #tpu.memory_space<vmem>>, vector<8x16xf32>
    tpu.vector_store %arg6[%c8_95, %c217_96], %72 {strides = array<i32>} : memref<16x512xf32, #tpu.memory_space<vmem>>, vector<8x16xf32>,
    %c0_97 = arith.constant 0 : index
    %c0_98 = arith.constant 0 : index
    %c192 = arith.constant 192 : index
    %74 = vector.load %arg1[%c0_97, %c0_98, %c192] : memref<1x4x256xf32, #tpu.memory_space<vmem>>, vector<1x4x16xf32>
    %75 = vector.shape_cast %74 : vector<1x4x16xf32> to vector<4x16xf32>
    %c0_99 = arith.constant 0 : index
    %c235 = arith.constant 235 : index
    %76 = vector.load %arg6[%c0_99, %c235] : memref<16x512xf32, #tpu.memory_space<vmem>>, vector<4x16xf32>
    tpu.vector_store %arg6[%c0_99, %c235], %75 {strides = array<i32>} : memref<16x512xf32, #tpu.memory_space<vmem>>, vector<4x16xf32>,
    %c0_100 = arith.constant 0 : index
    %c0_101 = arith.constant 0 : index
    %c192_102 = arith.constant 192 : index
    %77 = vector.load %arg2[%c0_100, %c0_101, %c192_102] : memref<1x8x256xf32, #tpu.memory_space<vmem>>, vector<1x8x16xf32>
    %78 = vector.shape_cast %77 : vector<1x8x16xf32> to vector<8x16xf32>
    %c8_103 = arith.constant 8 : index
    %c235_104 = arith.constant 235 : index
    %79 = vector.load %arg6[%c8_103, %c235_104] : memref<16x512xf32, #tpu.memory_space<vmem>>, vector<8x16xf32>
    tpu.vector_store %arg6[%c8_103, %c235_104], %78 {strides = array<i32>} : memref<16x512xf32, #tpu.memory_space<vmem>>, vector<8x16xf32>,
    %c0_105 = arith.constant 0 : index
    %c0_106 = arith.constant 0 : index
    %c208 = arith.constant 208 : index
    %80 = vector.load %arg1[%c0_105, %c0_106, %c208] : memref<1x4x256xf32, #tpu.memory_space<vmem>>, vector<1x4x16xf32>
    %81 = vector.shape_cast %80 : vector<1x4x16xf32> to vector<4x16xf32>
    %c0_107 = arith.constant 0 : index
    %c253 = arith.constant 253 : index
    %82 = vector.load %arg6[%c0_107, %c253] : memref<16x512xf32, #tpu.memory_space<vmem>>, vector<4x16xf32>
    tpu.vector_store %arg6[%c0_107, %c253], %81 {strides = array<i32>} : memref<16x512xf32, #tpu.memory_space<vmem>>, vector<4x16xf32>,
    %c0_108 = arith.constant 0 : index
    %c0_109 = arith.constant 0 : index
    %c208_110 = arith.constant 208 : index
    %83 = vector.load %arg2[%c0_108, %c0_109, %c208_110] : memref<1x8x256xf32, #tpu.memory_space<vmem>>, vector<1x8x16xf32>
    %84 = vector.shape_cast %83 : vector<1x8x16xf32> to vector<8x16xf32>
    %c8_111 = arith.constant 8 : index
    %c253_112 = arith.constant 253 : index
    %85 = vector.load %arg6[%c8_111, %c253_112] : memref<16x512xf32, #tpu.memory_space<vmem>>, vector<8x16xf32>
    tpu.vector_store %arg6[%c8_111, %c253_112], %84 {strides = array<i32>} : memref<16x512xf32, #tpu.memory_space<vmem>>, vector<8x16xf32>,
    %c0_113 = arith.constant 0 : index
    %c0_114 = arith.constant 0 : index
    %c224 = arith.constant 224 : index
    %86 = vector.load %arg1[%c0_113, %c0_114, %c224] : memref<1x4x256xf32, #tpu.memory_space<vmem>>, vector<1x4x16xf32>
    %87 = vector.shape_cast %86 : vector<1x4x16xf32> to vector<4x16xf32>
    %c0_115 = arith.constant 0 : index
    %c271 = arith.constant 271 : index
    %88 = vector.load %arg6[%c0_115, %c271] : memref<16x512xf32, #tpu.memory_space<vmem>>, vector<4x16xf32>
    tpu.vector_store %arg6[%c0_115, %c271], %87 {strides = array<i32>} : memref<16x512xf32, #tpu.memory_space<vmem>>, vector<4x16xf32>,
    %c0_116 = arith.constant 0 : index
    %c0_117 = arith.constant 0 : index
    %c224_118 = arith.constant 224 : index
    %89 = vector.load %arg2[%c0_116, %c0_117, %c224_118] : memref<1x8x256xf32, #tpu.memory_space<vmem>>, vector<1x8x16xf32>
    %90 = vector.shape_cast %89 : vector<1x8x16xf32> to vector<8x16xf32>
    %c8_119 = arith.constant 8 : index
    %c271_120 = arith.constant 271 : index
    %91 = vector.load %arg6[%c8_119, %c271_120] : memref<16x512xf32, #tpu.memory_space<vmem>>, vector<8x16xf32>
    tpu.vector_store %arg6[%c8_119, %c271_120], %90 {strides = array<i32>} : memref<16x512xf32, #tpu.memory_space<vmem>>, vector<8x16xf32>,
    %c0_121 = arith.constant 0 : index
    %c0_122 = arith.constant 0 : index
    %c240 = arith.constant 240 : index
    %92 = vector.load %arg1[%c0_121, %c0_122, %c240] : memref<1x4x256xf32, #tpu.memory_space<vmem>>, vector<1x4x16xf32>
    %93 = vector.shape_cast %92 : vector<1x4x16xf32> to vector<4x16xf32>
    %c0_123 = arith.constant 0 : index
    %c289 = arith.constant 289 : index
    %94 = vector.load %arg6[%c0_123, %c289] : memref<16x512xf32, #tpu.memory_space<vmem>>, vector<4x16xf32>
    tpu.vector_store %arg6[%c0_123, %c289], %93 {strides = array<i32>} : memref<16x512xf32, #tpu.memory_space<vmem>>, vector<4x16xf32>,
    %c0_124 = arith.constant 0 : index
    %c0_125 = arith.constant 0 : index
    %c240_126 = arith.constant 240 : index
    %95 = vector.load %arg2[%c0_124, %c0_125, %c240_126] : memref<1x8x256xf32, #tpu.memory_space<vmem>>, vector<1x8x16xf32>
    %96 = vector.shape_cast %95 : vector<1x8x16xf32> to vector<8x16xf32>
    %c8_127 = arith.constant 8 : index
    %c289_128 = arith.constant 289 : index
    %97 = vector.load %arg6[%c8_127, %c289_128] : memref<16x512xf32, #tpu.memory_space<vmem>>, vector<8x16xf32>
    tpu.vector_store %arg6[%c8_127, %c289_128], %96 {strides = array<i32>} : memref<16x512xf32, #tpu.memory_space<vmem>>, vector<8x16xf32>,
    %c0_129 = arith.constant 0 : index
    %c0_130 = arith.constant 0 : index
    %98 = vector.load %arg4[%c0_129, %c0_130] : memref<48x1xf32, #tpu.memory_space<vmem>>, vector<48x1xf32>
    %cst_131 = arith.constant 0.000000e+00 : f32
    %99 = vector.broadcast %cst_131 : f32 to vector<48x384xf32>
    %c0_132 = arith.constant 0 : index
    %c0_133 = arith.constant 0 : index
    %100 = vector.load %arg6[%c0_132, %c0_133] : memref<16x512xf32, #tpu.memory_space<vmem>>, vector<16x384xf32>
    %c0_134 = arith.constant 0 : index
    %c0_135 = arith.constant 0 : index
    %c0_136 = arith.constant 0 : index
    %101 = vector.load %arg3[%c0_134, %c0_135, %c0_136] : memref<9x48x16xf32, #tpu.memory_space<vmem>>, vector<1x48x16xf32>
    %102 = vector.shape_cast %101 : vector<1x48x16xf32> to vector<48x16xf32>
    %cst_137 = arith.constant dense<0.000000e+00> : vector<48x384xf32>
    %103 = tpu.matmul %102, %100, %cst_137 {dimension_numbers = #tpu.dot_dimension_numbers<[1], [0], [0], [1], [0, 0, 1, 1], [], []>} : vector<48x16xf32>, vector<16x384xf32>, vector<48x384xf32> -> vector<48x384xf32>
    %104 = arith.addf %99, %103 : vector<48x384xf32>
    %c0_138 = arith.constant 0 : index
    %c1 = arith.constant 1 : index
    %105 = vector.load %arg6[%c0_138, %c1] : memref<16x512xf32, #tpu.memory_space<vmem>>, vector<16x384xf32>
    %c1_139 = arith.constant 1 : index
    %c0_140 = arith.constant 0 : index
    %c0_141 = arith.constant 0 : index
    %106 = vector.load %arg3[%c1_139, %c0_140, %c0_141] : memref<9x48x16xf32, #tpu.memory_space<vmem>>, vector<1x48x16xf32>
    %107 = vector.shape_cast %106 : vector<1x48x16xf32> to vector<48x16xf32>
    %cst_142 = arith.constant dense<0.000000e+00> : vector<48x384xf32>
    %108 = tpu.matmul %107, %105, %cst_142 {dimension_numbers = #tpu.dot_dimension_numbers<[1], [0], [0], [1], [0, 0, 1, 1], [], []>} : vector<48x16xf32>, vector<16x384xf32>, vector<48x384xf32> -> vector<48x384xf32>
    %109 = arith.addf %104, %108 : vector<48x384xf32>
    %c0_143 = arith.constant 0 : index
    %c2 = arith.constant 2 : index
    %110 = vector.load %arg6[%c0_143, %c2] : memref<16x512xf32, #tpu.memory_space<vmem>>, vector<16x384xf32>
    %c2_144 = arith.constant 2 : index
    %c0_145 = arith.constant 0 : index
    %c0_146 = arith.constant 0 : index
    %111 = vector.load %arg3[%c2_144, %c0_145, %c0_146] : memref<9x48x16xf32, #tpu.memory_space<vmem>>, vector<1x48x16xf32>
    %112 = vector.shape_cast %111 : vector<1x48x16xf32> to vector<48x16xf32>
    %cst_147 = arith.constant dense<0.000000e+00> : vector<48x384xf32>
    %113 = tpu.matmul %112, %110, %cst_147 {dimension_numbers = #tpu.dot_dimension_numbers<[1], [0], [0], [1], [0, 0, 1, 1], [], []>} : vector<48x16xf32>, vector<16x384xf32>, vector<48x384xf32> -> vector<48x384xf32>
    %114 = arith.addf %109, %113 : vector<48x384xf32>
    %c0_148 = arith.constant 0 : index
    %c18 = arith.constant 18 : index
    %115 = vector.load %arg6[%c0_148, %c18] : memref<16x512xf32, #tpu.memory_space<vmem>>, vector<16x384xf32>
    %c3 = arith.constant 3 : index
    %c0_149 = arith.constant 0 : index
    %c0_150 = arith.constant 0 : index
    %116 = vector.load %arg3[%c3, %c0_149, %c0_150] : memref<9x48x16xf32, #tpu.memory_space<vmem>>, vector<1x48x16xf32>
    %117 = vector.shape_cast %116 : vector<1x48x16xf32> to vector<48x16xf32>
    %cst_151 = arith.constant dense<0.000000e+00> : vector<48x384xf32>
    %118 = tpu.matmul %117, %115, %cst_151 {dimension_numbers = #tpu.dot_dimension_numbers<[1], [0], [0], [1], [0, 0, 1, 1], [], []>} : vector<48x16xf32>, vector<16x384xf32>, vector<48x384xf32> -> vector<48x384xf32>
    %119 = arith.addf %114, %118 : vector<48x384xf32>
    %c0_152 = arith.constant 0 : index
    %c19_153 = arith.constant 19 : index
    %120 = vector.load %arg6[%c0_152, %c19_153] : memref<16x512xf32, #tpu.memory_space<vmem>>, vector<16x384xf32>
    %c4 = arith.constant 4 : index
    %c0_154 = arith.constant 0 : index
    %c0_155 = arith.constant 0 : index
    %121 = vector.load %arg3[%c4, %c0_154, %c0_155] : memref<9x48x16xf32, #tpu.memory_space<vmem>>, vector<1x48x16xf32>
    %122 = vector.shape_cast %121 : vector<1x48x16xf32> to vector<48x16xf32>
    %cst_156 = arith.constant dense<0.000000e+00> : vector<48x384xf32>
    %123 = tpu.matmul %122, %120, %cst_156 {dimension_numbers = #tpu.dot_dimension_numbers<[1], [0], [0], [1], [0, 0, 1, 1], [], []>} : vector<48x16xf32>, vector<16x384xf32>, vector<48x384xf32> -> vector<48x384xf32>
    %124 = arith.addf %119, %123 : vector<48x384xf32>
    %c0_157 = arith.constant 0 : index
    %c20 = arith.constant 20 : index
    %125 = vector.load %arg6[%c0_157, %c20] : memref<16x512xf32, #tpu.memory_space<vmem>>, vector<16x384xf32>
    %c5 = arith.constant 5 : index
    %c0_158 = arith.constant 0 : index
    %c0_159 = arith.constant 0 : index
    %126 = vector.load %arg3[%c5, %c0_158, %c0_159] : memref<9x48x16xf32, #tpu.memory_space<vmem>>, vector<1x48x16xf32>
    %127 = vector.shape_cast %126 : vector<1x48x16xf32> to vector<48x16xf32>
    %cst_160 = arith.constant dense<0.000000e+00> : vector<48x384xf32>
    %128 = tpu.matmul %127, %125, %cst_160 {dimension_numbers = #tpu.dot_dimension_numbers<[1], [0], [0], [1], [0, 0, 1, 1], [], []>} : vector<48x16xf32>, vector<16x384xf32>, vector<48x384xf32> -> vector<48x384xf32>
    %129 = arith.addf %124, %128 : vector<48x384xf32>
    %c0_161 = arith.constant 0 : index
    %c36 = arith.constant 36 : index
    %130 = vector.load %arg6[%c0_161, %c36] : memref<16x512xf32, #tpu.memory_space<vmem>>, vector<16x384xf32>
    %c6 = arith.constant 6 : index
    %c0_162 = arith.constant 0 : index
    %c0_163 = arith.constant 0 : index
    %131 = vector.load %arg3[%c6, %c0_162, %c0_163] : memref<9x48x16xf32, #tpu.memory_space<vmem>>, vector<1x48x16xf32>
    %132 = vector.shape_cast %131 : vector<1x48x16xf32> to vector<48x16xf32>
    %cst_164 = arith.constant dense<0.000000e+00> : vector<48x384xf32>
    %133 = tpu.matmul %132, %130, %cst_164 {dimension_numbers = #tpu.dot_dimension_numbers<[1], [0], [0], [1], [0, 0, 1, 1], [], []>} : vector<48x16xf32>, vector<16x384xf32>, vector<48x384xf32> -> vector<48x384xf32>
    %134 = arith.addf %129, %133 : vector<48x384xf32>
    %c0_165 = arith.constant 0 : index
    %c37_166 = arith.constant 37 : index
    %135 = vector.load %arg6[%c0_165, %c37_166] : memref<16x512xf32, #tpu.memory_space<vmem>>, vector<16x384xf32>
    %c7 = arith.constant 7 : index
    %c0_167 = arith.constant 0 : index
    %c0_168 = arith.constant 0 : index
    %136 = vector.load %arg3[%c7, %c0_167, %c0_168] : memref<9x48x16xf32, #tpu.memory_space<vmem>>, vector<1x48x16xf32>
    %137 = vector.shape_cast %136 : vector<1x48x16xf32> to vector<48x16xf32>
    %cst_169 = arith.constant dense<0.000000e+00> : vector<48x384xf32>
    %138 = tpu.matmul %137, %135, %cst_169 {dimension_numbers = #tpu.dot_dimension_numbers<[1], [0], [0], [1], [0, 0, 1, 1], [], []>} : vector<48x16xf32>, vector<16x384xf32>, vector<48x384xf32> -> vector<48x384xf32>
    %139 = arith.addf %134, %138 : vector<48x384xf32>
    %c0_170 = arith.constant 0 : index
    %c38 = arith.constant 38 : index
    %140 = vector.load %arg6[%c0_170, %c38] : memref<16x512xf32, #tpu.memory_space<vmem>>, vector<16x384xf32>
    %c8_171 = arith.constant 8 : index
    %c0_172 = arith.constant 0 : index
    %c0_173 = arith.constant 0 : index
    %141 = vector.load %arg3[%c8_171, %c0_172, %c0_173] : memref<9x48x16xf32, #tpu.memory_space<vmem>>, vector<1x48x16xf32>
    %142 = vector.shape_cast %141 : vector<1x48x16xf32> to vector<48x16xf32>
    %cst_174 = arith.constant dense<0.000000e+00> : vector<48x384xf32>
    %143 = tpu.matmul %142, %140, %cst_174 {dimension_numbers = #tpu.dot_dimension_numbers<[1], [0], [0], [1], [0, 0, 1, 1], [], []>} : vector<48x16xf32>, vector<16x384xf32>, vector<48x384xf32> -> vector<48x384xf32>
    %144 = arith.addf %139, %143 : vector<48x384xf32>
    %145 = vector.broadcast %98 : vector<48x1xf32> to vector<48x384xf32>
    %146 = arith.addf %144, %145 : vector<48x384xf32>
    %147 = vector.extract_strided_slice %146 {offsets = [0, 0], sizes = [8, 384], strides = [1, 1]} : vector<48x384xf32> to vector<8x384xf32>
    %148 = vector.extract_strided_slice %146 {offsets = [8, 0], sizes = [8, 384], strides = [1, 1]} : vector<48x384xf32> to vector<8x384xf32>
    %149 = vector.extract_strided_slice %146 {offsets = [16, 0], sizes = [8, 384], strides = [1, 1]} : vector<48x384xf32> to vector<8x384xf32>
    %150 = vector.extract_strided_slice %146 {offsets = [24, 0], sizes = [8, 384], strides = [1, 1]} : vector<48x384xf32> to vector<8x384xf32>
    %151 = vector.extract_strided_slice %146 {offsets = [32, 0], sizes = [8, 384], strides = [1, 1]} : vector<48x384xf32> to vector<8x384xf32>
    %152 = vector.extract_strided_slice %146 {offsets = [40, 0], sizes = [8, 384], strides = [1, 1]} : vector<48x384xf32> to vector<8x384xf32>
    %153 = arith.addf %147, %150 : vector<8x384xf32>
    %154 = arith.negf %153 : vector<8x384xf32>
    %155 = math.exp %154 : vector<8x384xf32>
    %cst_175 = arith.constant 1.000000e+00 : f32
    %156 = vector.broadcast %cst_175 : f32 to vector<8x384xf32>
    %157 = arith.addf %156, %155 : vector<8x384xf32>
    %158 = arith.divf %156, %157 : vector<8x384xf32>
    %159 = arith.addf %148, %151 : vector<8x384xf32>
    %160 = arith.negf %159 : vector<8x384xf32>
    %161 = math.exp %160 : vector<8x384xf32>
    %cst_176 = arith.constant 1.000000e+00 : f32
    %162 = vector.broadcast %cst_176 : f32 to vector<8x384xf32>
    %163 = arith.addf %162, %161 : vector<8x384xf32>
    %164 = arith.divf %162, %163 : vector<8x384xf32>
    %165 = arith.mulf %158, %152 : vector<8x384xf32>
    %166 = arith.addf %149, %165 : vector<8x384xf32>
    %167 = math.tanh %166 : vector<8x384xf32>
    %c8_177 = arith.constant 8 : index
    %c19_178 = arith.constant 19 : index
    %168 = vector.load %arg6[%c8_177, %c19_178] : memref<16x512xf32, #tpu.memory_space<vmem>>, vector<8x384xf32>
    %169 = arith.mulf %164, %168 : vector<8x384xf32>
    %cst_179 = arith.constant 1.000000e+00 : f32
    %170 = vector.broadcast %cst_179 : f32 to vector<8x384xf32>
    %171 = arith.subf %170, %164 : vector<8x384xf32>
    %172 = arith.mulf %171, %167 : vector<8x384xf32>
    %173 = arith.addf %169, %172 : vector<8x384xf32>
    %c0_180 = arith.constant 0 : index
    %c0_181 = arith.constant 0 : index
    %c0_182 = arith.constant 0 : index
    %174 = vector.load %arg5[%c0_180, %c0_181, %c0_182] : memref<1x8x384xf32, #tpu.memory_space<vmem>>, vector<1x8x384xf32>
    %175 = vector.shape_cast %174 : vector<1x8x384xf32> to vector<8x384xf32>
    %176 = vector.shape_cast %173 : vector<8x384xf32> to vector<1x8x384xf32>
    tpu.vector_store %arg5[%c0_180, %c0_181, %c0_182], %176 {strides = array<i32>} : memref<1x8x384xf32, #tpu.memory_space<vmem>>, vector<1x8x384xf32>,
    return
  }
  func.func @transform_0(%arg0: i32) -> (i32, i32, i32) {
    %c0_i32 = arith.constant 0 : i32
    %c0_i32_0 = arith.constant 0 : i32
    %c0_i32_1 = arith.constant 0 : i32
    return %arg0, %c0_i32, %c0_i32_0 : i32, i32, i32
  }
  func.func @transform_1(%arg0: i32) -> (i32, i32, i32) {
    %c0_i32 = arith.constant 0 : i32
    %c0_i32_0 = arith.constant 0 : i32
    %c0_i32_1 = arith.constant 0 : i32
    return %arg0, %c0_i32, %c0_i32_0 : i32, i32, i32
  }
  func.func @transform_2(%arg0: i32) -> (i32, i32, i32) {
    %c0_i32 = arith.constant 0 : i32
    %c0_i32_0 = arith.constant 0 : i32
    %c0_i32_1 = arith.constant 0 : i32
    %c0_i32_2 = arith.constant 0 : i32
    return %c0_i32, %c0_i32_0, %c0_i32_1 : i32, i32, i32
  }
  func.func @transform_3(%arg0: i32) -> (i32, i32) {
    %c0_i32 = arith.constant 0 : i32
    %c0_i32_0 = arith.constant 0 : i32
    %c0_i32_1 = arith.constant 0 : i32
    return %c0_i32, %c0_i32_0 : i32, i32
  }
  func.func @transform_4(%arg0: i32) -> (i32, i32, i32) {
    %c0_i32 = arith.constant 0 : i32
    %c0_i32_0 = arith.constant 0 : i32
    %c0_i32_1 = arith.constant 0 : i32
    return %arg0, %c0_i32, %c0_i32_0 : i32, i32, i32
  }
}

</mosaic_0001>

<bundles_post_ra>
// kernel: tpu_custom_call.1
= control target key start
LH: loop header
LB: loop body
LE: loop exit
PB: predicated region body
PF: predicated region fallthrough
CT: control target
= control target key end

     0   :  { %9 = vsyncpa [#allocation4], 0  ;;  %s4434_s0 = inlined_call_operand.vmem [shape: f32[2,4,256], index: 0, kind: input, shape index: {}]   ;;  %s4435_s1 = inlined_call_operand.vmem [shape: f32[2,8,256], index: 1, kind: input, shape index: {}]   ;;  %s4436_s2 = inlined_call_operand.vmem [shape: f32[9,48,16], index: 2, kind: input, shape index: {}]   ;;  %s4437_s3 = inlined_call_operand.vmem [shape: f32[48,1], index: 3, kind: input, shape index: {}]   ;;  %s4438_s4 = inlined_call_operand.hbm [shape: f32[2,8,384], index: 4, kind: output, shape index: {}]  }
   0x1   :  { %11 = vsyncpa [#allocation4 + $0x1], 0  ;;  %s3628_s15 = smov 0   ;;  %s3630_s16 = smov 0  }
   0x2   :  { %s3632_s17 = smov 0   ;;  %s3634_s18 = smov 0  }
   0x3 LB: > { %s3649_s19 = sadd.s32 4294967295, %s3574_s18   ;;  %s3031_s20 = sadd.s32 4294967294, %s3574_s18   ;;  %s3574_s18 = sphi %s3634_s18, %s4471_s18   ;;  %s3570_s17 = sphi %s3632_s17, %s4470_s17   ;;  %s3566_s16 = sphi %s3630_s16, %s4469_s16   ;;  %s3562_s15 = sphi %s3628_s15, %s4468_s15  }
   0x4   : > { %s3653_s21 = sadd.s32 1, %s3574_s18   ;;  %s118_s22 = sadd.s32 1, %s3570_s17 }
   0x5   : > { %s115_s23 = ssub.s32 %s3574_s18, %s3653_s21  ;;  %p128_p0 = scmp.ne.s32.totalorder %s3570_s17, %s3566_s16 }
   0x6   : > { %p116_p1 = scmp.eq.s32.totalorder %s115_s23, 0  ;;  %p129_p2 = scmp.eq.s32.totalorder %s3649_s19, 1 }
   0x7   : > { %p134_p3 = scmp.ne.s32.totalorder %s3566_s16, %s3562_s15  ;;  %p135_p4 = scmp.eq.s32.totalorder %s3031_s20, 1 }
   0x8   : > { %s3664_s24 = scalar_select %p116_p1, %s3570_s17, %s118_s22  }
   0x9   : > { %p3666_p5 = por %p129_p2, %p128_p0  ;;  %p3670_p6 = por %p135_p4, %p134_p3 }
   0xa   : > { %p3034_p7 = scmp.ge.s32.totalorder %s3574_s18, 1  ;;  %p175_p8 = scmp.lt.s32.totalorder %s3574_s18, 3 }
   0xc   : > { %p176_p9 = pnand %p3034_p7, %p175_p8 }
   0xe   : > { %179 = sbr.rel (%p176_p9) target bundleno = 751 (0x2ef), region = 36 }
  0x13   : > { %p206_p10 = scmp.lt.s32.totalorder %s3649_s19, 1  ;;  %v3576_v0 = vmov 0.0   ;;  %s3577_s10 = smov 31   ;;  %vm324_vm0 = vcmask 121856   ;;  %vm236_vm1 = vcmask 285848   ;;  %vm338_vm2 = vcmask 269448  }
  0x14   : > { %221 = vst [vmem:[#allocation2 + $0x28] sm:$0xff] %v3576_v0  ;;  %216 = vst [vmem:[#allocation2] sm:$0xff] %v3576_v0  ;;  %609 = vmatprep.mubr.f32.mxu0 %v3576_v0  ;;  %639 = vmatprep.mubr.f32.mxu1 %v3576_v0  ;;  %s3578_s11 = smov 19   ;;  %s3579_s12 = smov 33   ;;  %vm315_vm3 = vcmask 117760   ;;  %vm352_vm4 = vcmask 417048  }
  0x15   : > { %217 = vst [vmem:[#allocation2 + $0x8] sm:$0xff] %v3576_v0  ;;  %218 = vst [vmem:[#allocation2 + $0x10] sm:$0xff] %v3576_v0  ;;  %s207_s27 = scalar_select %p206_p10, %s3649_s19, 1  ;;  %vm250_vm5 = vcmask 433448   ;;  %vm331_vm6 = vcmask 265352   ;;  %vm366_vm7 = vcmask 564648  }
  0x16   : > { %219 = vst [vmem:[#allocation2 + $0x18] sm:$0xff] %v3576_v0  ;;  %220 = vst [vmem:[#allocation2 + $0x20] sm:$0xff] %v3576_v0  ;;  %s3580_s13 = smov 35   ;;  %s3581_s14 = smov 21   ;;  %vm264_vm8 = vcmask 581048   ;;  %vm229_vm9 = vcmask 281752  }
  0x17   : > { %222 = vst [vmem:[#allocation2 + $0x30] sm:$0xff] %v3576_v0  ;;  %s3205_s28 = sshll.u32 %s207_s27, 4  ;;  %s3204_s29 = sshll.u32 %s207_s27, 3  ;;  %vm380_vm10 = vcmask 712248   ;;  %vm345_vm11 = vcmask 412952   ;;  %vm278_vm12 = vcmask 728648  }
  0x18   : > { %s215_s6 = scalar_lea.vmem %s4435_s1, %s3205_s28  ;;  %s3693_s9 = scalar_lea.vmem %s4434_s0, %s3204_s29  ;;  %vm243_vm13 = vcmask 429352   ;;  %vm394_vm14 = vcmask 859848   ;;  %vm359_vm15 = vcmask 560552  }
  0x19   : > { %v317_v1 = vld [vmem:[%s215_s6] sm:$0xff]  ;;  %v347_v3 = vld [vmem:[%s215_s6 + $0x8] sm:$0xff]  ;;  %s3582_s20 = smov 37   ;;  %s3583_s22 = smov 23  }
  0x1a   : > { %319 = vrot.lane.b32.xlu0 %v317_v1, %s3577_s10  ;;  %233 = vrot.lane.b32.xlu1 %v317_v1, %s3578_s11  ;;  %v308_v2 = vld [vmem:[%s3693_s9] sm:$0xf]  ;;  %v340_v6 = vld [vmem:[%s3693_s9 + $0x4] sm:$0xf]  ;;  %s3584_s23 = smov 39   ;;  %s3585_s27 = smov 25  }
  0x1b   : > { %v326_v4 = vld [vmem:[%s3693_s9] sm:$0xf]  ;;  %v354_v8 = vld [vmem:[%s3693_s9 + $0x4] sm:$0xf]  ;;  %s3586_s28 = smov 41   ;;  %s3587_s29 = smov 45  }
  0x1c   : > { %v224_v5 = vld [vmem:[%s3693_s9] sm:$0xf]  ;;  %v368_v10 = vld [vmem:[%s3693_s9 + $0x4] sm:$0xf]  ;;  %s3588_s30 = smov 27   ;;  %s3589_s5 = smov 47  }
  0x1d   : > { %v238_v7 = vld [vmem:[%s3693_s9] sm:$0xf]  ;;  %s3590_s6 = smov 43   ;;  %s3591_s7 = smov 29   ;;  %v410_v12 = vld [vmem:[%s3693_s9 + $0x4] sm:$0xf] }
  0x1e   : > { %335 = vrot.lane.b32.xlu0 %v317_v1, %s3579_s12  ;;  %310 = vrot.lane.b32.xlu1 %v308_v2, %s3577_s10  ;;  %v252_v9 = vld [vmem:[%s3693_s9] sm:$0xf]  ;;  %v382_v13 = vld [vmem:[%s3693_s9 + $0x4] sm:$0xf]  ;;  %s3592_s8 = smov 49   ;;  %s3594_s10 = smov 126  }
  0x1f   : > { %v266_v11 = vld [vmem:[%s3693_s9] sm:$0xf]  ;;  %v428_v15 = vld [vmem:[%s3693_s9 + $0x4] sm:$0xf] }
  0x20   : > { %v280_v14 = vld [vmem:[%s3693_s9] sm:$0xf]  ;;  %v396_v16 = vld [vmem:[%s3693_s9 + $0x4] sm:$0xf] }
  0x21   : > { %v442_v17 = vld [vmem:[%s3693_s9 + $0x4] sm:$0xf]  ;;  %v294_v18 = vld [vmem:[%s3693_s9] sm:$0xf]  ;;  %s3593_s9 = smov 127  }
  0x22   : > { %349 = vrot.lane.b32.xlu0 %v347_v3, %s3580_s13  ;;  %247 = vrot.lane.b32.xlu1 %v317_v1, %s3581_s14 }
  0x26   : > { %328 = vrot.lane.b32.xlu0 %v326_v4, %s3579_s12  ;;  %363 = vrot.lane.b32.xlu1 %v347_v3, %s3582_s20  ;;  %s3596_s12 = smov 109  }
  0x2a   : > { %261 = vrot.lane.b32.xlu1 %v317_v1, %s3583_s22  ;;  %226 = vrot.lane.b32.xlu0 %v224_v5, %s3578_s11  ;;  %s3595_s11 = smov 110   ;;  %v3044_v5 = vld [vmem:[%s4436_s2 + $0x58] sm:$0xff] }
  0x2e   : > { %377 = vrot.lane.b32.xlu1 %v347_v3, %s3584_s23  ;;  %342 = vrot.lane.b32.xlu0 %v340_v6, %s3580_s13  ;;  %s3597_s13 = smov 108  }
  0x32   : > { %275 = vrot.lane.b32.xlu1 %v317_v1, %s3585_s27  ;;  %240 = vrot.lane.b32.xlu0 %v238_v7, %s3581_s14  ;;  %s3598_s14 = smov 92  }
  0x36   : > { %391 = vrot.lane.b32.xlu1 %v347_v3, %s3586_s28  ;;  %356 = vrot.lane.b32.xlu0 %v354_v8, %s3582_s20  ;;  %s3599_s20 = smov 91  }
  0x3a   : > { %254 = vrot.lane.b32.xlu1 %v252_v9, %s3583_s22  ;;  %421 = vrot.lane.b32.xlu0 %v347_v3, %s3587_s29  ;;  %s3600_s22 = smov 90   ;;  %v3040_v9 = vld [vmem:[%s4436_s2 + $0x38] sm:$0xff] }
  0x3e   : > { %370 = vrot.lane.b32.xlu1 %v368_v10, %s3584_s23  ;;  %289 = vrot.lane.b32.xlu0 %v317_v1, %s3588_s30 }
  0x42   : > { %437 = vrot.lane.b32.xlu1 %v347_v3, %s3589_s5  ;;  %405 = vrot.lane.b32.xlu0 %v347_v3, %s3590_s6 }
  0x46   : > { %303 = vrot.lane.b32.xlu1 %v317_v1, %s3591_s7  ;;  %268 = vrot.lane.b32.xlu0 %v266_v11, %s3585_s27  ;;  %s203_s27 = sand.u32 1, %s3566_s16  }
  0x4a   : > { %412 = vrot.lane.b32.xlu1 %v410_v12, %s3587_s29  ;;  %384 = vrot.lane.b32.xlu0 %v382_v13, %s3586_s28  ;;  %v3041_v13 = vld [vmem:[%s4436_s2 + $0x40] sm:$0xff]  ;;  %s3399_s28 = smul.u32 24, %s203_s27 }
  0x4b   : > { %s3400_s29 = smul.u32 384, %s3649_s19  ;;  %s2946_s19 = scalar_lea.sflag [#allocation4], %s203_s27 }
  0x4e   : > { %282 = vrot.lane.b32.xlu1 %v280_v14, %s3588_s30  ;;  %451 = vrot.lane.b32.xlu0 %v347_v3, %s3592_s8  ;;  %v3039_v3 = vld [vmem:[%s4436_s2 + $0x30] sm:$0xff]  ;;  %s205_s30 = scalar_lea.vmem [#allocation3], %s3399_s28 }
  0x52   : > { %430 = vrot.lane.b32.xlu1 %v428_v15, %s3589_s5  ;;  %398 = vrot.lane.b32.xlu0 %v396_v16, %s3590_s6  ;;  %v3042_v15 = vld [vmem:[%s4436_s2 + $0x48] sm:$0xff]  ;;  %s2960_s5 = sshll.u32 %s205_s30, 4  ;;  %s2961_s5 = int_to_ptr.vmem [resolvable:$true] %s2960_s5 }
  0x56   : > { %444 = vrot.lane.b32.xlu1 %v442_v17, %s3592_s8  ;;  %296 = vrot.lane.b32.xlu0 %v294_v18, %s3591_s7  ;;  %v3043_v18 = vld [vmem:[%s4436_s2 + $0x50] sm:$0xff]  ;;  %s4399_s8 = scalar_lea.hbm %s4438_s4, %s3400_s29 }
  0x8c   : > { %v3711_v19 = vpop.permute.xlu0 %319  ;;  %v234_v20 = vpop.permute.xlu1 %233 }
  0x8d   : > { %325 = vst.msk [vmem:[#allocation2 + $0x28] sm:$0xff] %vm324_vm0, %v3711_v19  ;;  %vm257_vm0 = vcmask 576952  }
  0x8e   : > { %237 = vst.msk [vmem:[#allocation2 + $0x20] sm:$0xff] %vm236_vm1, %v234_v20  ;;  %vm426_vm1 = vcmask 105472  }
  0x90   : > { %v336_v21 = vpop.permute.xlu0 %335  ;;  %v3714_v22 = vpop.permute.xlu1 %310 }
  0x91   : > { %339 = vst.msk [vmem:[#allocation2 + $0x28] sm:$0xff] %vm338_vm2, %v336_v21  ;;  %vm373_vm2 = vcmask 708152   ;;  %v468_v21 = vld [vmem:[%s4436_s2] sm:$0xff] }
  0x92   : > { %316 = vst.msk [vmem:[#allocation2 + $0x8] sm:$0xf] %vm315_vm3, %v3714_v22  ;;  %vm292_vm3 = vcmask 876248  }
  0x94   : > { %v350_v23 = vpop.permute.xlu0 %349  ;;  %v248_v24 = vpop.permute.xlu1 %247 }
  0x95   : > { %353 = vst.msk [vmem:[#allocation2 + $0x28] sm:$0xff] %vm352_vm4, %v350_v23  ;;  %vm440_vm4 = vcmask 253048  }
  0x96   : > { %251 = vst.msk [vmem:[#allocation2 + $0x20] sm:$0xff] %vm250_vm5, %v248_v24  ;;  %vm408_vm5 = vcmask 1007448  }
  0x98   : > { %v329_v25 = vpop.permute.xlu0 %328  ;;  %v364_v26 = vpop.permute.xlu1 %363 }
  0x99   : > { %332 = vst.msk [vmem:[#allocation2 + $0x8] sm:$0xf] %vm331_vm6, %v329_v25  ;;  %vm424_vm6 = vcmask 1048552  }
  0x9a   : > { %367 = vst.msk [vmem:[#allocation2 + $0x28] sm:$0xff] %vm366_vm7, %v364_v26  ;;  %vm306_vm7 = vcmask 1023848   ;;  %v469_v26 = vld [vmem:[%s4436_s2 + $0x8] sm:$0xff] }
  0x9c   : > { %v262_v27 = vpop.permute.xlu1 %261  ;;  %v227_v28 = vpop.permute.xlu0 %226 }
  0x9d   : > { %265 = vst.msk [vmem:[#allocation2 + $0x20] sm:$0xff] %vm264_vm8, %v262_v27  ;;  %vm271_vm8 = vcmask 724552  }
  0x9e   : > { %230 = vst.msk [vmem:[#allocation2] sm:$0xf] %vm229_vm9, %v227_v28  ;;  %vm322_vm9 = vcmask 1048568  }
  0xa0   : > { %v378_v29 = vpop.permute.xlu1 %377  ;;  %v343_v30 = vpop.permute.xlu0 %342 }
  0xa1   : > { %381 = vst.msk [vmem:[#allocation2 + $0x28] sm:$0xff] %vm380_vm10, %v378_v29  ;;  %vm417_vm10 = vcmask 101376  }
  0xa2   : > { %346 = vst.msk [vmem:[#allocation2 + $0x8] sm:$0xf] %vm345_vm11, %v343_v30  ;;  %vm387_vm11 = vcmask 855752  }
  0xa4   : > { %v276_v31 = vpop.permute.xlu1 %275  ;;  %v241_v32 = vpop.permute.xlu0 %240 }
  0xa5   : > { %279 = vst.msk [vmem:[#allocation2 + $0x20] sm:$0xff] %vm278_vm12, %v276_v31  ;;  %vm285_vm12 = vcmask 872152  }
  0xa6   : > { %244 = vst.msk [vmem:[#allocation2] sm:$0xf] %vm243_vm13, %v241_v32  ;;  %vm454_vm13 = vcmask 400648   ;;  %v470_v32 = vld [vmem:[%s4436_s2 + $0x10] sm:$0xff] }
  0xa8   : > { %v392_v33 = vpop.permute.xlu1 %391  ;;  %v357_v34 = vpop.permute.xlu0 %356 }
  0xa9   : > { %395 = vst.msk [vmem:[#allocation2 + $0x28] sm:$0xff] %vm394_vm14, %v392_v33  ;;  %vm433_vm14 = vcmask 248952  }
  0xaa   : > { %360 = vst.msk [vmem:[#allocation2 + $0x8] sm:$0xf] %vm359_vm15, %v357_v34  ;;  %vm401_vm15 = vcmask 1003352   ;;  %v471_v34 = vld [vmem:[%s4436_s2 + $0x18] sm:$0xff] }
  0xac   : > { %v255_v35 = vpop.permute.xlu1 %254  ;;  %v422_v36 = vpop.permute.xlu0 %421 }
  0xad   : > { %258 = vst.msk [vmem:[#allocation2] sm:$0xf] %vm257_vm0, %v255_v35  ;;  %vm415_vm0 = vcmask 1044456  }
  0xae   : > { %427 = vst.msk [vmem:[#allocation2 + $0x30] sm:$0xff] %vm426_vm1, %v422_v36  ;;  %vm447_vm1 = vcmask 396552  }
  0xb0   : > { %v371_v37 = vpop.permute.xlu1 %370  ;;  %v290_v38 = vpop.permute.xlu0 %289 }
  0xb1   : > { %374 = vst.msk [vmem:[#allocation2 + $0x8] sm:$0xf] %vm373_vm2, %v371_v37  ;;  %vm299_vm2 = vcmask 1019752   ;;  %v472_v37 = vld [vmem:[%s4436_s2 + $0x20] sm:$0xff] }
  0xb2   : > { %293 = vst.msk [vmem:[#allocation2 + $0x20] sm:$0xff] %vm292_vm3, %v290_v38  ;;  %vm313_vm3 = vcmask 1044472  }
  0xb4   : > { %v438_v39 = vpop.permute.xlu1 %437  ;;  %v406_v40 = vpop.permute.xlu0 %405 }
  0xb5   : > { %441 = vst.msk [vmem:[#allocation2 + $0x30] sm:$0xff] %vm440_vm4, %v438_v39  ;;  %vm513_vm4 = vcmask 1039360  }
  0xb6   : > { %409 = vst.msk [vmem:[#allocation2 + $0x28] sm:$0xff] %vm408_vm5, %v406_v40  ;;  %vm526_vm5 = vcmask 130048  }
  0xb7   : > { %425 = vst.msk [vmem:[#allocation2 + $0x28] sm:$0xff] %vm424_vm6, %v422_v36  ;;  %vm978_vm6 = vcmask 1031168  }
  0xb8   : > { %v304_v41 = vpop.permute.xlu1 %303  ;;  %v269_v42 = vpop.permute.xlu0 %268 }
  0xb9   : > { %307 = vst.msk [vmem:[#allocation2 + $0x20] sm:$0xff] %vm306_vm7, %v304_v41  ;;  %vm1246_vm7 = vcmask 900096   ;;  %v473_v41 = vld [vmem:[%s4436_s2 + $0x28] sm:$0xff] }
  0xba   : > { %272 = vst.msk [vmem:[#allocation2] sm:$0xf] %vm271_vm8, %v269_v42  ;;  %vm1514_vm8 = vcmask 891904  }
  0xbb   : > { %323 = vst.msk [vmem:[#allocation2 + $0x20] sm:$0xff] %vm322_vm9, %v3711_v19  ;;  %vm1782_vm9 = vcmask 883712  }
  0xbc   : > { %v413_v43 = vpop.permute.xlu1 %412  ;;  %v385_v44 = vpop.permute.xlu0 %384 }
  0xbd   : > { %418 = vst.msk [vmem:[#allocation2 + $0x10] sm:$0xf] %vm417_vm10, %v413_v43  ;;  %vm2050_vm10 = vcmask 752640  }
  0xbe   : > { %388 = vst.msk [vmem:[#allocation2 + $0x8] sm:$0xf] %vm387_vm11, %v385_v44  ;;  %v3721_v50 = vld [vmem:[#allocation2 + $0x28] sm:$0xff]  ;;  %v3069_v44 = vld [vmem:[%s4436_s2 + $0x60] sm:$0xff]  ;;  %vm2318_vm11 = vcmask 744448  }
  0xc0   : > { %v283_v45 = vpop.permute.xlu1 %282  ;;  %v452_v46 = vpop.permute.xlu0 %451 }
  0xc1   : > { %286 = vst.msk [vmem:[#allocation2] sm:$0xf] %vm285_vm12, %v283_v45  ;;  %vm2586_vm12 = vcmask 736256  }
  0xc2   : > { %455 = vst.msk [vmem:[#allocation2 + $0x30] sm:$0xff] %vm454_vm13, %v452_v46  ;;  %v3718_v47 = vld [vmem:[#allocation2 + $0x20] sm:$0xff] }
  0xc3   : > { %505 = vrot.lane.b32.xlu0 %v3718_v47, %s3593_s9 }
  0xc4   : > { %v431_v48 = vpop.permute.xlu1 %430  ;;  %v399_v49 = vpop.permute.xlu0 %398 }
  0xc5   : > { %434 = vst.msk [vmem:[#allocation2 + $0x10] sm:$0xf] %vm433_vm14, %v431_v48  ;;  %v3070_v48 = vld [vmem:[%s4436_s2 + $0x68] sm:$0xff] }
  0xc6   : > { %402 = vst.msk [vmem:[#allocation2 + $0x8] sm:$0xf] %vm401_vm15, %v399_v49 }
  0xc7   : > { %416 = vst.msk [vmem:[#allocation2 + $0x8] sm:$0xf] %vm415_vm0, %v413_v43  ;;  %507 = vrot.lane.b32.xlu0 %v3721_v50, %s3593_s9 }
  0xc8   : > { %v445_v51 = vpop.permute.xlu1 %444  ;;  %v297_v52 = vpop.permute.xlu0 %296 }
  0xc9   : > { %v3724_v53 = vld [vmem:[#allocation2 + $0x30] sm:$0xff]  ;;  %448 = vst.msk [vmem:[#allocation2 + $0x10] sm:$0xf] %vm447_vm1, %v445_v51 }
  0xca   : > { %300 = vst.msk [vmem:[#allocation2] sm:$0xf] %vm299_vm2, %v297_v52  ;;  %509 = vrot.lane.b32.xlu1 %v3724_v53, %s3593_s9  ;;  %v3071_v52 = vld [vmem:[%s4436_s2 + $0x70] sm:$0xff] }
  0xcb   : > { %314 = vst.msk [vmem:[#allocation2] sm:$0xf] %vm313_vm3, %v3714_v22 }
  0xce   : > { %v3728_v54 = vld [vmem:[#allocation2 + $0x8] sm:$0xff] }
  0xcf   : > { %499 = vrot.lane.b32.xlu1 %v3728_v54, %s3593_s9 }
  0xd0   : > { %v3731_v55 = vld [vmem:[#allocation2 + $0x10] sm:$0xff] }
  0xd1   : > { %501 = vrot.lane.b32.xlu0 %v3731_v55, %s3593_s9 }
  0xd2   : > { %v3734_v56 = vld [vmem:[#allocation2] sm:$0xff] }
  0xd3   : > { %497 = vrot.lane.b32.xlu1 %v3734_v56, %s3593_s9 }
  0xd5   : > { %511 = vrot.lane.b32.xlu0 %v3576_v0, %s3593_s9 }
  0xd7   : > { %503 = vrot.lane.b32.xlu1 %v3576_v0, %s3593_s9  ;;  %s3514_s9 = scalar_lea.vmem %s2961_s5, 384 }
  0xd8   : > { %p3515_p11 = scmp.ne.s32.totalorder %s2961_s5, %s3514_s9 }
  0xd9   : > { %970 = vrot.lane.b32.xlu0 %v3718_v47, %s3594_s10 }
  0xda   : > { %p3516_p12 = pnand %p3515_p11, %p3666_p5 }
  0xdb   : > { %974 = vrot.lane.b32.xlu1 %v3724_v53, %s3594_s10 }
  0xdc   : > { %p3517_p13 = pneg %p3516_p12 }
  0xdd   : > { %972 = vrot.lane.b32.xlu0 %v3721_v50, %s3594_s10 }
  0xdf   : > { %964 = vrot.lane.b32.xlu1 %v3728_v54, %s3594_s10 }
  0xe1   : > { %966 = vrot.lane.b32.xlu0 %v3731_v55, %s3594_s10 }
  0xe3   : > { %962 = vrot.lane.b32.xlu1 %v3734_v56, %s3594_s10 }
  0xe5   : > { %3467 = vrot.lane.b32.xlu0 %v3576_v0, %s3594_s10  ;;  %s3602_s10 = smov [#allocation3]  }
  0xe7   : > { %1238 = vrot.lane.b32.xlu1 %v3718_v47, %s3595_s11 }
  0xe9   : > { %1242 = vrot.lane.b32.xlu0 %v3724_v53, %s3595_s11 }
  0xeb   : > { %1234 = vrot.lane.b32.xlu1 %v3731_v55, %s3595_s11 }
  0xed   : > { %1244 = vrot.lane.b32.xlu0 %v3576_v0, %s3595_s11 }
  0xef   : > { %1240 = vrot.lane.b32.xlu1 %v3721_v50, %s3595_s11 }
  0xf1   : > { %1232 = vrot.lane.b32.xlu0 %v3728_v54, %s3595_s11 }
  0xf3   : > { %1230 = vrot.lane.b32.xlu1 %v3734_v56, %s3595_s11 }
  0xf5   : > { %1236 = vrot.lane.b32.xlu0 %v3576_v0, %s3595_s11  ;;  %s3518_s11 = sshll.u32 %s3602_s10, 4  ;;  %s3519_s11 = int_to_ptr.vmem [resolvable:$false] %s3518_s11 }
  0xf6   : > { %p3521_p0 = scmp.lt.s32.totalorder %s2961_s5, %s3519_s11 }
  0xf7   : > { %1506 = vrot.lane.b32.xlu1 %v3718_v47, %s3596_s12 }
  0xf9   : > { %1510 = vrot.lane.b32.xlu0 %v3724_v53, %s3596_s12 }
  0xfb   : > { %1508 = vrot.lane.b32.xlu1 %v3721_v50, %s3596_s12 }
  0xfd   : > { %1500 = vrot.lane.b32.xlu0 %v3728_v54, %s3596_s12 }
  0xff   : > { %1502 = vrot.lane.b32.xlu1 %v3731_v55, %s3596_s12 }
 0x101   : > { %1498 = vrot.lane.b32.xlu0 %v3734_v56, %s3596_s12 }
 0x103   : > { %3472 = vrot.lane.b32.xlu1 %v3576_v0, %s3596_s12  ;;  %s3520_s12 = scalar_lea.vmem %s3519_s11, 768 }
 0x104   : > { %p3522_p1 = scmp.lt.s32.totalorder %s3520_s12, %s3514_s9 }
 0x105   : > { %1774 = vrot.lane.b32.xlu0 %v3718_v47, %s3597_s13 }
 0x106   : > { %p3523_p2 = por %p3522_p1, %p3521_p0 }
 0x107   : > { %1778 = vrot.lane.b32.xlu1 %v3724_v53, %s3597_s13 }
 0x108   : > { %p3524_p3 = pnand %p3523_p2, %p3517_p13 }
 0x109   : > { %1770 = vrot.lane.b32.xlu0 %v3731_v55, %s3597_s13 }
 0x10b   : > { %1780 = vrot.lane.b32.xlu1 %v3576_v0, %s3597_s13 }
 0x10d   : > { %1776 = vrot.lane.b32.xlu0 %v3721_v50, %s3597_s13 }
 0x10f   : > { %1768 = vrot.lane.b32.xlu1 %v3728_v54, %s3597_s13 }
 0x111   : > { %1766 = vrot.lane.b32.xlu0 %v3734_v56, %s3597_s13 }
 0x113   : > { %1772 = vrot.lane.b32.xlu1 %v3576_v0, %s3597_s13 }
 0x115   : > { %2044 = vrot.lane.b32.xlu0 %v3721_v50, %s3598_s14 }
 0x117   : > { %2046 = vrot.lane.b32.xlu1 %v3724_v53, %s3598_s14 }
 0x119   : > { %2042 = vrot.lane.b32.xlu0 %v3718_v47, %s3598_s14 }
 0x11b   : > { %2036 = vrot.lane.b32.xlu1 %v3728_v54, %s3598_s14 }
 0x11d   : > { %2038 = vrot.lane.b32.xlu0 %v3731_v55, %s3598_s14 }
 0x11f   : > { %2034 = vrot.lane.b32.xlu1 %v3734_v56, %s3598_s14 }
 0x121   : > { %3477 = vrot.lane.b32.xlu0 %v3576_v0, %s3598_s14 }
 0x123   : > { %2312 = vrot.lane.b32.xlu1 %v3721_v50, %s3599_s20 }
 0x125   : > { %2314 = vrot.lane.b32.xlu0 %v3724_v53, %s3599_s20 }
 0x127   : > { %2310 = vrot.lane.b32.xlu1 %v3718_v47, %s3599_s20 }
 0x129   : > { %2304 = vrot.lane.b32.xlu0 %v3728_v54, %s3599_s20 }
 0x12b   : > { %2306 = vrot.lane.b32.xlu1 %v3731_v55, %s3599_s20 }
 0x12d   : > { %2316 = vrot.lane.b32.xlu0 %v3576_v0, %s3599_s20 }
 0x12f   : > { %2302 = vrot.lane.b32.xlu1 %v3734_v56, %s3599_s20 }
 0x131   : > { %2308 = vrot.lane.b32.xlu0 %v3576_v0, %s3599_s20 }
 0x133   : > { %2580 = vrot.lane.b32.xlu1 %v3721_v50, %s3600_s22 }
 0x135   : > { %v506_v57 = vpop.permute.xlu0 %505  ;;  %2582 = vrot.lane.b32.xlu0 %v3724_v53, %s3600_s22 }
 0x137   : > { %2578 = vrot.lane.b32.xlu1 %v3718_v47, %s3600_s22 }
 0x139   : > { %2572 = vrot.lane.b32.xlu0 %v3728_v54, %s3600_s22  ;;  %v508_v58 = vpop.permute.xlu0 %507 }
 0x13a   : > { %v517_v61 = vsel %vm513_vm4, %v506_v57, %v508_v58 }
 0x13b   : > { %2574 = vrot.lane.b32.xlu1 %v3731_v55, %s3600_s22 }
 0x13c   : > { %v510_v59 = vpop.permute.xlu1 %509 }
 0x13d   : > { %v518_v60 = vsel %vm513_vm4, %v508_v58, %v510_v59  ;;  %2570 = vrot.lane.b32.xlu0 %v3734_v56, %s3600_s22 }
 0x13e   : > { %573 = vmatprep.subr.mxu0 %v518_v60  ;;  %3395 = vmatprep.subr.mxu1 %v518_v60 }
 0x13f   : > { %2584 = vrot.lane.b32.xlu1 %v3576_v0, %s3600_s22  ;;  %574 = vmatpush1.msra.mxu0 %v517_v61 }
 0x140   : > { %3397 = vmatpush1.msra.mxu1 %v517_v61  ;;  %v3073_v61 = vld [vmem:[%s4436_s2 + $0x80] sm:$0xff] }
 0x141   : > { %v500_v62 = vpop.permute.xlu1 %499  ;;  %2576 = vrot.lane.b32.xlu0 %v3576_v0, %s3600_s22 }
 0x143   : > { %v502_v63 = vpop.permute.xlu0 %501 }
 0x144   : > { %v515_v2 = vsel %vm513_vm4, %v500_v62, %v502_v63 }
 0x145   : > { %v498_v1 = vpop.permute.xlu1 %497  ;;  %575 = vmatprep.subr.mxu0 %v515_v2  ;;  %3396 = vmatprep.subr.mxu1 %v515_v2  ;;  %v3074_v2 = vld [vmem:[%s4436_s2 + $0x88] sm:$0xff] }
 0x146   : > { %v514_v4 = vsel %vm513_vm4, %v498_v1, %v500_v62 }
 0x147   : > { %576 = vmatpush1.msra.mxu0 %v514_v4  ;;  %3398 = vmatpush1.msra.mxu1 %v514_v4  ;;  %v512_v6 = vpop.permute.xlu0 %511  ;;  %v3087_v4 = vld [vmem:[%s4436_s2 + $0x90] sm:$0xff] }
 0x148   : > { %3045 = vmatmul.mubr.msk.f32.vlgmr.msra.gmra.mxu0 %vm526_vm5, %v3039_v3  ;;  %3291 = vmatprep.subr.mxu0 %v3724_v53  ;;  %v519_v8 = vsel %vm513_vm4, %v510_v59, %v512_v6 }
 0x149   : > { %v504_v7 = vpop.permute.xlu1 %503  ;;  %3292 = vmatpush3.msra.mxu0 %v3724_v53  ;;  %3050 = vmatmul.mubr.msk.f32.vlgmr.msra.gmra.mxu1 %vm526_vm5, %v3044_v5 }
 0x14a   : > { %3278 = vmatprep.subr.mxu1 %v519_v8  ;;  %3293 = vmatprep.subr.mxu0 %v3731_v55  ;;  %v516_v10 = vsel %vm513_vm4, %v502_v63, %v504_v7 }
 0x14b   : > { %615 = vmatprep.mubr.f32.mxu0 %v3576_v0  ;;  %3279 = vmatpush3.msra.mxu1 %v519_v8  ;;  %v971_v11 = vpop.permute.xlu0 %970  ;;  %v3088_v8 = vld [vmem:[%s4436_s2 + $0x98] sm:$0xff] }
 0x14c   : > { %3294 = vmatpush3.msra.mxu0 %v3731_v55  ;;  %3280 = vmatprep.subr.mxu1 %v516_v10  ;;  %v3072_v55 = vld [vmem:[%s4436_s2 + $0x78] sm:$0xff] }
 0x14d   : > { %3046 = vmatmul.mubr.msk.f32.gmra.mxu0 %vm526_vm5, %v3040_v9  ;;  %v975_v12 = vpop.permute.xlu1 %974  ;;  %3281 = vmatpush3.msra.mxu1 %v516_v10 }
 0x14e   : > { %3282 = vmatprep.mubr.msk.f32.mxu1 %vm526_vm5, %v3039_v3  ;;  %787 = vmatprep.subr.mxu1 %v3721_v50 }
 0x14f   : > { %3283 = vmatmul.mubr.msk.f32.vlgmr.msra.gmra.mxu1 %vm526_vm5, %v3040_v9  ;;  %621 = vmatprep.mubr.f32.mxu0 %v3576_v0  ;;  %v973_v14 = vpop.permute.xlu0 %972 }
 0x150   : > { %788 = vmatpush1.msra.mxu1 %v3718_v47  ;;  %3285 = vmatprep.mubr.msk.f32.mxu1 %vm526_vm5, %v3041_v13  ;;  %v983_v17 = vsel %vm978_vm6, %v973_v14, %v975_v12  ;;  %v982_v29 = vsel %vm978_vm6, %v971_v11, %v973_v14 }
 0x151   : > { %3047 = vmatmul.mubr.msk.f32.gmra.mxu0 %vm526_vm5, %v3041_v13  ;;  %789 = vmatprep.subr.mxu1 %v3728_v54  ;;  %v965_v16 = vpop.permute.xlu1 %964 }
 0x152   : > { %790 = vmatpush1.msra.mxu1 %v3734_v56  ;;  %1037 = vmatprep.subr.mxu0 %v983_v17  ;;  %v3090_v17 = vld [vmem:[%s4436_s2 + $0xa8] sm:$0xff] }
 0x153   : > { %3286 = vmatmul.mubr.msk.f32.gmra.mxu1 %vm526_vm5, %v3042_v15  ;;  %627 = vmatprep.mubr.f32.mxu0 %v3576_v0  ;;  %v967_v19 = vpop.permute.xlu0 %966 }
 0x154   : > { %3288 = vmatprep.mubr.msk.f32.mxu1 %vm526_vm5, %v3043_v18  ;;  %v980_v33 = vsel %vm978_vm6, %v965_v16, %v967_v19 }
 0x155   : > { %3048 = vmatmul.mubr.msk.f32.gmra.mxu0 %vm526_vm5, %v3042_v15  ;;  %v963_v20 = vpop.permute.xlu1 %962  ;;  %v3089_v15 = vld [vmem:[%s4436_s2 + $0xa0] sm:$0xff] }
 0x156   : > { %633 = vmatprep.mubr.f32.mxu0 %v3576_v0  ;;  %v979_v35 = vsel %vm978_vm6, %v963_v20, %v965_v16  ;;  %v3091_v20 = vld [vmem:[%s4436_s2 + $0xb0] sm:$0xff] }
 0x157   : > { %3289 = vmatmul.mubr.msk.f32.gmra.mxu1 %vm526_vm5, %v3044_v5  ;;  %v3468_v22 = vpop.permute.xlu0 %3467 }
 0x158   : > { %823 = vmatprep.mubr.f32.mxu1 %v3576_v0  ;;  %v3470_v23 = vunpack.i.h.bf16 %v3468_v22  ;;  %v3469_v24 = vunpack.i.l.bf16 %v3468_v22  ;;  %v3092_v22 = vld [vmem:[%s4436_s2 + $0xb8] sm:$0xff] }
 0x159   : > { %3049 = vmatmul.mubr.msk.f32.gmra.mxu0 %vm526_vm5, %v3043_v18  ;;  %v3845_v25 = vpop.permute.xlu1 %1238 }
 0x15a   : > { %3295 = vmatprep.mubr.msk.f32.mxu0 %vm526_vm5, %v468_v21  ;;  %v984_v27 = vsel %vm978_vm6, %v975_v12, %v3469_v24  ;;  %v981_v31 = vsel %vm978_vm6, %v967_v19, %v3470_v23 }
 0x15b   : > { %3057 = vmatmul.mubr.msk.f32.vlgmr.msra.gmra.mxu1 %vm526_vm5, %v468_v21  ;;  %v1243_v28 = vpop.permute.xlu0 %1242  ;;  %3304 = vmatprep.subr.mxu1 %v984_v27 }
 0x15c   : > { %829 = vmatprep.mubr.f32.mxu1 %v3576_v0  ;;  %3305 = vmatpush3.msra.mxu1 %v984_v27 }
 0x15d   : > { %3296 = vmatmul.mubr.msk.f32.vlgmr.msra.gmra.mxu0 %vm526_vm5, %v469_v26  ;;  %v3856_v30 = vpop.permute.xlu1 %1234  ;;  %3306 = vmatprep.subr.mxu1 %v981_v31 }
 0x15e   : > { %1038 = vmatpush1.msra.mxu0 %v982_v29  ;;  %3298 = vmatprep.mubr.msk.f32.mxu0 %vm526_vm5, %v470_v32  ;;  %v3106_v29 = vld [vmem:[%s4436_s2 + $0xc8] sm:$0xff] }
 0x15f   : > { %1039 = vmatprep.subr.mxu0 %v980_v33  ;;  %3058 = vmatmul.mubr.msk.f32.gmra.mxu1 %vm526_vm5, %v469_v26  ;;  %v1245_v36 = vpop.permute.xlu0 %1244  ;;  %v3107_v33 = vld [vmem:[%s4436_s2 + $0xd0] sm:$0xff] }
 0x160   : > { %1040 = vmatpush1.msra.mxu0 %v979_v35  ;;  %3307 = vmatpush3.msra.mxu1 %v981_v31  ;;  %v1252_v39 = vsel %vm1246_vm7, %v1243_v28, %v1245_v36 }
 0x161   : > { %3299 = vmatmul.mubr.msk.f32.gmra.mxu0 %vm526_vm5, %v471_v34  ;;  %v1241_v38 = vpop.permute.xlu1 %1240  ;;  %835 = vmatprep.mubr.f32.mxu1 %v3576_v0 }
 0x162   : > { %3317 = vmatprep.subr.mxu0 %v1252_v39  ;;  %v1251_v40 = vsel %vm1246_vm7, %v1241_v38, %v1243_v28  ;;  %3301 = vmatprep.mubr.msk.f32.mxu0 %vm526_vm5, %v472_v37  ;;  %v1250_v56 = vsel %vm1246_vm7, %v3845_v25, %v1241_v38  ;;  %v3105_v25 = vld [vmem:[%s4436_s2 + $0xc0] sm:$0xff] }
 0x163   : > { %3059 = vmatmul.mubr.msk.f32.gmra.mxu1 %vm526_vm5, %v470_v32  ;;  %1305 = vmatprep.subr.mxu1 %v1251_v40  ;;  %v1233_v42 = vpop.permute.xlu0 %1232  ;;  %v456_v40 = vld [vmem:[%s4437_s3] sm:$0xff] }
 0x164   : > { %841 = vmatprep.mubr.f32.mxu1 %v3576_v0  ;;  %v1248_v57 = vsel %vm1246_vm7, %v1233_v42, %v3856_v30 }
 0x165   : > { %3302 = vmatmul.mubr.msk.f32.gmra.mxu0 %vm526_vm5, %v473_v41  ;;  %v1231_v43 = vpop.permute.xlu1 %1230 }
 0x166   : > { %1073 = vmatprep.mubr.f32.mxu0 %v3576_v0  ;;  %v1247_v59 = vsel %vm1246_vm7, %v1231_v43, %v1233_v42 }
 0x167   : > { %3060 = vmatmul.mubr.msk.f32.gmra.mxu1 %vm526_vm5, %v471_v34  ;;  %v1237_v45 = vpop.permute.xlu0 %1236 }
 0x168   : > { %847 = vmatprep.mubr.f32.mxu1 %v3576_v0  ;;  %v1249_v47 = vsel %vm1246_vm7, %v3856_v30, %v1237_v45 }
 0x169   : > { %3075 = vmatmul.mubr.msk.f32.vlgmr.msra.gmra.mxu0 %vm526_vm5, %v3069_v44  ;;  %v3890_v46 = vpop.permute.xlu1 %1506 }
 0x16a   : > { %3318 = vmatpush3.msra.mxu0 %v1252_v39  ;;  %1079 = vmatprep.mubr.f32.mxu0 %v3576_v0  ;;  %v3108_v39 = vld [vmem:[%s4436_s2 + $0xd8] sm:$0xff] }
 0x16b   : > { %3061 = vmatmul.mubr.msk.f32.gmra.mxu1 %vm526_vm5, %v472_v37  ;;  %3319 = vmatprep.subr.mxu0 %v1249_v47  ;;  %v1511_v49 = vpop.permute.xlu0 %1510  ;;  %v3601_v37 = vmov 0  }
 0x16c   : > { %3320 = vmatpush3.msra.mxu0 %v1249_v47  ;;  %853 = vmatprep.mubr.f32.mxu1 %v3576_v0  ;;  %v3110_v47 = vld [vmem:[%s4436_s2 + $0xe8] sm:$0xff] }
 0x16d   : > { %3076 = vmatmul.mubr.msk.f32.gmra.mxu0 %vm526_vm5, %v3070_v48  ;;  %v1509_v50 = vpop.permute.xlu1 %1508  ;;  %3481 = vset.pattern.permute.xlu1 %v3601_v37 }
 0x16e   : > { %1085 = vmatprep.mubr.f32.mxu0 %v3576_v0  ;;  %v3903_v51 = vsel %vm1514_vm8, %v1509_v50, %v1511_v49  ;;  %v3961_v11 = vsel %vm1514_vm8, %v3890_v46, %v1509_v50  ;;  %2833 = vperm.xlu1 %3481, %v456_v40   ;;  %v4054_v46 = vld [vmem:[#allocation2 + $0x18] sm:$0xff] }
 0x16f   : > { %4444 = vst [vmem:[#allocation6_spill] sm:$0xff] %v3903_v51  ;;  %3062 = vmatmul.mubr.msk.f32.gmra.mxu1 %vm526_vm5, %v473_v41  ;;  %1573 = vmatprep.subr.mxu0 %v3903_v51  ;;  %v1501_v53 = vpop.permute.xlu0 %1500  ;;  %4446 = vst [vmem:[#allocation8_spill] sm:$0xff] %v3961_v11  ;;  %v3164_v40 = vld [vmem:[%s4436_s2 + $0x178] sm:$0xff] }
 0x170   : > { %3308 = vmatprep.mubr.msk.f32.mxu1 %vm526_vm5, %v3069_v44  ;;  %v3109_v44 = vld [vmem:[%s4436_s2 + $0xe0] sm:$0xff]  ;;  %3482 = vset.pattern.permute.xlu0 %v3601_v37  ;;  %v3162_v37 = vld [vmem:[%s4436_s2 + $0x168] sm:$0xff] }
 0x171   : > { %3077 = vmatmul.mubr.msk.f32.gmra.mxu0 %vm526_vm5, %v3071_v52  ;;  %v1503_v54 = vpop.permute.xlu1 %1502 }
 0x172   : > { %1091 = vmatprep.mubr.f32.mxu0 %v3576_v0  ;;  %v1516_v14 = vsel %vm1514_vm8, %v1501_v53, %v1503_v54 }
 0x173   : > { %3309 = vmatmul.mubr.msk.f32.vlgmr.msra.gmra.mxu1 %vm526_vm5, %v3070_v48  ;;  %v1499_v58 = vpop.permute.xlu0 %1498  ;;  %v457_v48 = vld [vmem:[%s4437_s3 + $0x8] sm:$0xff] }
 0x174   : > { %1306 = vmatpush1.msra.mxu1 %v1250_v56  ;;  %3311 = vmatprep.mubr.msk.f32.mxu1 %vm526_vm5, %v3071_v52  ;;  %v1515_v16 = vsel %vm1514_vm8, %v1499_v58, %v1501_v53  ;;  %v3123_v53 = vld [vmem:[%s4436_s2 + $0xf0] sm:$0xff] }
 0x175   : > { %1307 = vmatprep.subr.mxu1 %v1248_v57  ;;  %3078 = vmatmul.mubr.msk.f32.gmra.mxu0 %vm526_vm5, %v3072_v55  ;;  %v3473_v60 = vpop.permute.xlu1 %3472  ;;  %v458_v58 = vld [vmem:[%s4437_s3 + $0x10] sm:$0xff] }
 0x176   : > { %1308 = vmatpush1.msra.mxu1 %v1247_v59  ;;  %v3474_v62 = vunpack.i.l.bf16 %v3473_v60  ;;  %1097 = vmatprep.mubr.f32.mxu0 %v3576_v0  ;;  %v3475_v5 = vunpack.i.h.bf16 %v3473_v60 }
 0x177   : > { %3312 = vmatmul.mubr.msk.f32.gmra.mxu1 %vm526_vm5, %v3072_v55  ;;  %v3929_v63 = vpop.permute.xlu0 %1774  ;;  %2838 = vperm.xlu1 %3481, %v457_v48   ;;  %v3124_v55 = vld [vmem:[%s4436_s2 + $0xf8] sm:$0xff] }
 0x178   : > { %3314 = vmatprep.mubr.msk.f32.mxu1 %vm526_vm5, %v3073_v61  ;;  %v3933_v1 = vsel %vm1514_vm8, %v1511_v49, %v3474_v62  ;;  %v1517_v9 = vsel %vm1514_vm8, %v1503_v54, %v3475_v5  ;;  %v460_v54 = vld [vmem:[%s4437_s3 + $0x20] sm:$0xff] }
 0x179   : > { %4445 = vst [vmem:[#allocation7_spill] sm:$0xff] %v3933_v1  ;;  %3079 = vmatmul.mubr.msk.f32.gmra.mxu0 %vm526_vm5, %v3073_v61  ;;  %v1779_v3 = vpop.permute.xlu1 %1778  ;;  %3330 = vmatprep.subr.mxu1 %v3933_v1  ;;  %v3125_v62 = vld [vmem:[%s4436_s2 + $0x100] sm:$0xff] }
 0x17a   : > { %1103 = vmatprep.mubr.f32.mxu0 %v3576_v0 }
 0x17b   : > { %3315 = vmatmul.mubr.msk.f32.gmra.mxu1 %vm526_vm5, %v3074_v2  ;;  %v3945_v6 = vpop.permute.xlu0 %1770  ;;  %2853 = vperm.xlu1 %3481, %v460_v54  }
 0x17c   : > { %1341 = vmatprep.mubr.f32.mxu1 %v3576_v0 }
 0x17d   : > { %3080 = vmatmul.mubr.msk.f32.gmra.mxu0 %vm526_vm5, %v3074_v2  ;;  %v1781_v7 = vpop.permute.xlu1 %1780  ;;  %v3126_v2 = vld [vmem:[%s4436_s2 + $0x108] sm:$0xff] }
 0x17e   : > { %3321 = vmatprep.mubr.msk.f32.mxu0 %vm526_vm5, %v3087_v4  ;;  %v1788_v18 = vsel %vm1782_vm9, %v1779_v3, %v1781_v7 }
 0x17f   : > { %3093 = vmatmul.mubr.msk.f32.vlgmr.msra.gmra.mxu1 %vm526_vm5, %v3087_v4  ;;  %v3956_v10 = vpop.permute.xlu0 %1776  ;;  %2843 = vperm.xlu1 %3481, %v458_v58   ;;  %v3127_v4 = vld [vmem:[%s4436_s2 + $0x110] sm:$0xff] }
 0x180   : > { %3331 = vmatpush3.msra.mxu1 %v3933_v1  ;;  %1347 = vmatprep.mubr.f32.mxu1 %v3576_v0  ;;  %v1787_v13 = vsel %vm1782_vm9, %v3956_v10, %v1779_v3  ;;  %v1786_v38 = vsel %vm1782_vm9, %v3929_v63, %v3956_v10  ;;  %v461_v10 = vld [vmem:[%s4437_s3 + $0x28] sm:$0xff] }
 0x181   : > { %3332 = vmatprep.subr.mxu1 %v1517_v9  ;;  %3322 = vmatmul.mubr.msk.f32.vlgmr.msra.gmra.mxu0 %vm526_vm5, %v3088_v8  ;;  %v3964_v12 = vpop.permute.xlu1 %1768 }
 0x182   : > { %1574 = vmatpush1.msra.mxu0 %v3961_v11  ;;  %3333 = vmatpush3.msra.mxu1 %v1517_v9  ;;  %v1784_v41 = vsel %vm1782_vm9, %v3964_v12, %v3945_v6 }
 0x183   : > { %1575 = vmatprep.subr.mxu0 %v1516_v14  ;;  %3094 = vmatmul.mubr.msk.f32.gmra.mxu1 %vm526_vm5, %v3088_v8  ;;  %v1767_v19 = vpop.permute.xlu0 %1766  ;;  %v3128_v8 = vld [vmem:[%s4436_s2 + $0x118] sm:$0xff] }
 0x184   : > { %1576 = vmatpush1.msra.mxu0 %v1515_v16  ;;  %1841 = vmatprep.subr.mxu1 %v1787_v13  ;;  %v3142_v16 = vld [vmem:[%s4436_s2 + $0x128] sm:$0xff] }
 0x185   : > { %3324 = vmatprep.mubr.msk.f32.mxu0 %vm526_vm5, %v3089_v15  ;;  %3343 = vmatprep.subr.mxu0 %v1788_v18  ;;  %v1773_v21 = vpop.permute.xlu1 %1772 }
 0x186   : > { %3325 = vmatmul.mubr.msk.f32.gmra.mxu0 %vm526_vm5, %v3090_v17  ;;  %1353 = vmatprep.mubr.f32.mxu1 %v3576_v0  ;;  %v1785_v28 = vsel %vm1782_vm9, %v3945_v6, %v1773_v21  ;;  %v459_v6 = vld [vmem:[%s4437_s3 + $0x18] sm:$0xff] }
 0x187   : > { %3095 = vmatmul.mubr.msk.f32.gmra.mxu1 %vm526_vm5, %v3089_v15  ;;  %3327 = vmatprep.mubr.msk.f32.mxu0 %vm526_vm5, %v3091_v20  ;;  %v3990_v23 = vpop.permute.xlu0 %2044  ;;  %v3144_v21 = vld [vmem:[%s4436_s2 + $0x138] sm:$0xff] }
 0x188   : > { %1359 = vmatprep.mubr.f32.mxu1 %v3576_v0  ;;  %2848 = vperm.xlu0 %3482, %v459_v6  }
 0x189   : > { %v2047_v24 = vpop.permute.xlu1 %2046 }
 0x18a   : > { %3328 = vmatmul.mubr.msk.f32.gmra.mxu0 %vm526_vm5, %v3092_v22  ;;  %v2055_v31 = vsel %vm2050_vm10, %v3990_v23, %v2047_v24 }
 0x18b   : > { %3096 = vmatmul.mubr.msk.f32.gmra.mxu1 %vm526_vm5, %v3090_v17  ;;  %1609 = vmatprep.mubr.f32.mxu0 %v3576_v0  ;;  %v3999_v26 = vpop.permute.xlu0 %2042 }
 0x18c   : > { %1365 = vmatprep.mubr.f32.mxu1 %v3576_v0  ;;  %v2054_v59 = vsel %vm2050_vm10, %v3999_v26, %v3990_v23  ;;  %2858 = vperm.xlu0 %3482, %v461_v10   ;;  %v3145_v26 = vld [vmem:[%s4436_s2 + $0x140] sm:$0xff] }
 0x18d   : > { %v4002_v27 = vpop.permute.xlu1 %2036 }
 0x18e   : > { %3111 = vmatmul.mubr.msk.f32.vlgmr.msra.gmra.mxu0 %vm526_vm5, %v3105_v25 }
 0x18f   : > { %3344 = vmatpush3.msra.mxu0 %v1788_v18  ;;  %3097 = vmatmul.mubr.msk.f32.gmra.mxu1 %vm526_vm5, %v3091_v20  ;;  %v4012_v30 = vpop.permute.xlu0 %2038 }
 0x190   : > { %3345 = vmatprep.subr.mxu0 %v1785_v28  ;;  %1615 = vmatprep.mubr.f32.mxu0 %v3576_v0  ;;  %v2052_v63 = vsel %vm2050_vm10, %v4002_v27, %v4012_v30 }
 0x191   : > { %3346 = vmatpush3.msra.mxu0 %v1785_v28  ;;  %v4016_v32 = vpop.permute.xlu1 %2034  ;;  %1371 = vmatprep.mubr.f32.mxu1 %v3576_v0 }
 0x192   : > { %2109 = vmatprep.subr.mxu0 %v2055_v31  ;;  %3112 = vmatmul.mubr.msk.f32.gmra.mxu0 %vm526_vm5, %v3106_v29  ;;  %v2051_v3 = vsel %vm2050_vm10, %v4016_v32, %v4002_v27  ;;  %v3160_v32 = vld [vmem:[%s4436_s2 + $0x158] sm:$0xff] }
 0x193   : > { %3098 = vmatmul.mubr.msk.f32.gmra.mxu1 %vm526_vm5, %v3092_v22  ;;  %1621 = vmatprep.mubr.f32.mxu0 %v3576_v0  ;;  %v3478_v34 = vpop.permute.xlu0 %3477 }
 0x194   : > { %3334 = vmatprep.mubr.msk.f32.mxu1 %vm526_vm5, %v3105_v25  ;;  %v3479_v35 = vunpack.i.l.bf16 %v3478_v34  ;;  %v3480_v50 = vunpack.i.h.bf16 %v3478_v34 }
 0x195   : > { %v4026_v36 = vpop.permute.xlu1 %2312 }
 0x196   : > { %3113 = vmatmul.mubr.msk.f32.gmra.mxu0 %vm526_vm5, %v3107_v33  ;;  %v2056_v42 = vsel %vm2050_vm10, %v2047_v24, %v3479_v35  ;;  %v2053_v57 = vsel %vm2050_vm10, %v4012_v30, %v3480_v50  ;;  %v3159_v30 = vld [vmem:[%s4436_s2 + $0x150] sm:$0xff]  ;;  %v3161_v35 = vld [vmem:[%s4436_s2 + $0x160] sm:$0xff] }
 0x197   : > { %3335 = vmatmul.mubr.msk.f32.vlgmr.msra.gmra.mxu1 %vm526_vm5, %v3106_v29  ;;  %1627 = vmatprep.mubr.f32.mxu0 %v3576_v0  ;;  %v1783_v0 = vsel %vm1782_vm9, %v1767_v19, %v3964_v12  ;;  %v2315_v45 = vpop.permute.xlu0 %2314  ;;  %v3141_v12 = vld [vmem:[%s4436_s2 + $0x120] sm:$0xff]  ;;  %v3143_v19 = vld [vmem:[%s4436_s2 + $0x130] sm:$0xff]  ;;  %v3146_v29 = vld [vmem:[%s4436_s2 + $0x148] sm:$0xff] }
 0x198   : > { %1842 = vmatpush1.msra.mxu1 %v1786_v38  ;;  %3337 = vmatprep.mubr.msk.f32.mxu1 %vm526_vm5, %v3107_v33  ;;  %v2323_v61 = vsel %vm2318_vm11, %v4026_v36, %v2315_v45 }
 0x199   : > { %1843 = vmatprep.subr.mxu1 %v1784_v41  ;;  %v4047_v43 = vpop.permute.xlu1 %2310  ;;  %v3177_v41 = vld [vmem:[%s4436_s2 + $0x180] sm:$0xff] }
 0x19a   : > { %3114 = vmatmul.mubr.msk.f32.gmra.mxu0 %vm526_vm5, %v3108_v39  ;;  %1844 = vmatpush1.msra.mxu1 %v1783_v0  ;;  %v2322_v22 = vsel %vm2318_vm11, %v4047_v43, %v4026_v36  ;;  %v3179_v0 = vld [vmem:[%s4436_s2 + $0x190] sm:$0xff]  ;;  %v3180_v43 = vld [vmem:[%s4436_s2 + $0x198] sm:$0xff] }
 0x19b   : > { %3356 = vmatprep.subr.mxu1 %v2056_v42  ;;  %3338 = vmatmul.mubr.msk.f32.gmra.mxu1 %vm526_vm5, %v3108_v39  ;;  %v4069_v52 = vpop.permute.xlu0 %2304  ;;  %v3163_v39 = vld [vmem:[%s4436_s2 + $0x170] sm:$0xff] }
 0x19c   : > { %1633 = vmatprep.mubr.f32.mxu0 %v4054_v46  ;;  %3340 = vmatprep.mubr.msk.f32.mxu1 %vm526_vm5, %v3109_v44 }
 0x19d   : > { %v4065_v49 = vpop.permute.xlu1 %2306 }
 0x19e   : > { %3115 = vmatmul.mubr.msk.f32.gmra.mxu0 %vm526_vm5, %v3109_v44  ;;  %v2320_v24 = vsel %vm2318_vm11, %v4069_v52, %v4065_v49  ;;  %v3181_v44 = vld [vmem:[%s4436_s2 + $0x1a0] sm:$0xff] }
 0x19f   : > { %3341 = vmatmul.mubr.msk.f32.gmra.mxu1 %vm526_vm5, %v3110_v47  ;;  %1639 = vmatprep.mubr.f32.mxu0 %v4054_v46  ;;  %v2317_v60 = vpop.permute.xlu0 %2316 }
 0x1a0   : > { %1877 = vmatprep.mubr.f32.mxu1 %v4054_v46  ;;  %v2324_v5 = vsel %vm2318_vm11, %v2315_v45, %v2317_v60  ;;  %v3182_v45 = vld [vmem:[%s4436_s2 + $0x1a8] sm:$0xff] }
 0x1a1   : > { %v4084_v56 = vpop.permute.xlu1 %2302 }
 0x1a2   : > { %3116 = vmatmul.mubr.msk.f32.gmra.mxu0 %vm526_vm5, %v3110_v47  ;;  %v2319_v25 = vsel %vm2318_vm11, %v4084_v56, %v4069_v52 }
 0x1a3   : > { %3129 = vmatmul.mubr.msk.f32.vlgmr.msra.gmra.mxu1 %vm526_vm5, %v3123_v53  ;;  %3347 = vmatprep.mubr.msk.f32.mxu0 %vm526_vm5, %v3123_v53  ;;  %v2309_v9 = vpop.permute.xlu0 %2308 }
 0x1a4   : > { %3357 = vmatpush3.msra.mxu1 %v2056_v42  ;;  %1883 = vmatprep.mubr.f32.mxu1 %v4054_v46  ;;  %v2321_v15 = vsel %vm2318_vm11, %v4065_v49, %v2309_v9  ;;  %v3178_v42 = vld [vmem:[%s4436_s2 + $0x188] sm:$0xff] }
 0x1a5   : > { %3358 = vmatprep.subr.mxu1 %v2053_v57  ;;  %v4119_v7 = vpop.permute.xlu1 %2580 }
 0x1a6   : > { %3348 = vmatmul.mubr.msk.f32.vlgmr.msra.gmra.mxu0 %vm526_vm5, %v3124_v55  ;;  %3359 = vmatpush3.msra.mxu1 %v2053_v57 }
 0x1a7   : > { %2110 = vmatpush1.msra.mxu0 %v2054_v59  ;;  %2377 = vmatprep.subr.mxu1 %v2323_v61  ;;  %v2583_v14 = vpop.permute.xlu0 %2582 }
 0x1a8   : > { %2111 = vmatprep.subr.mxu0 %v2052_v63  ;;  %3130 = vmatmul.mubr.msk.f32.gmra.mxu1 %vm526_vm5, %v3124_v55  ;;  %v2591_v17 = vsel %vm2586_vm12, %v4119_v7, %v2583_v14 }
 0x1a9   : > { %2112 = vmatpush1.msra.mxu0 %v2051_v3  ;;  %3350 = vmatprep.mubr.msk.f32.mxu0 %vm526_vm5, %v3125_v62  ;;  %v2579_v13 = vpop.permute.xlu1 %2578 }
 0x1aa   : > { %3369 = vmatprep.subr.mxu0 %v2324_v5  ;;  %3351 = vmatmul.mubr.msk.f32.gmra.mxu0 %vm526_vm5, %v3126_v2  ;;  %v2590_v34 = vsel %vm2586_vm12, %v2579_v13, %v4119_v7 }
 0x1ab   : > { %1889 = vmatprep.mubr.f32.mxu1 %v4054_v46  ;;  %3353 = vmatprep.mubr.msk.f32.mxu0 %vm526_vm5, %v3127_v4  ;;  %v2573_v20 = vpop.permute.xlu0 %2572 }
 0x1ac   : > { %3131 = vmatmul.mubr.msk.f32.gmra.mxu1 %vm526_vm5, %v3125_v62 }
 0x1ad   : > { %1895 = vmatprep.mubr.f32.mxu1 %v4054_v46  ;;  %v2575_v18 = vpop.permute.xlu1 %2574 }
 0x1ae   : > { %3354 = vmatmul.mubr.msk.f32.gmra.mxu0 %vm526_vm5, %v3128_v8  ;;  %v2588_v36 = vsel %vm2586_vm12, %v2573_v20, %v2575_v18 }
 0x1af   : > { %2145 = vmatprep.mubr.f32.mxu0 %v4054_v46  ;;  %v2571_v28 = vpop.permute.xlu0 %2570 }
 0x1b0   : > { %3132 = vmatmul.mubr.msk.f32.gmra.mxu1 %vm526_vm5, %v3126_v2  ;;  %v2587_v38 = vsel %vm2586_vm12, %v2571_v28, %v2573_v20 }
 0x1b1   : > { %1901 = vmatprep.mubr.f32.mxu1 %v4054_v46  ;;  %v2585_v23 = vpop.permute.xlu1 %2584 }
 0x1b2   : > { %3147 = vmatmul.mubr.msk.f32.vlgmr.msra.gmra.mxu0 %vm526_vm5, %v3141_v12  ;;  %v2592_v27 = vsel %vm2586_vm12, %v2583_v14, %v2585_v23 }
 0x1b3   : > { %3370 = vmatpush3.msra.mxu0 %v2324_v5  ;;  %2151 = vmatprep.mubr.f32.mxu0 %v4054_v46  ;;  %v2577_v31 = vpop.permute.xlu0 %2576 }
 0x1b4   : > { %3371 = vmatprep.subr.mxu0 %v2321_v15  ;;  %3133 = vmatmul.mubr.msk.f32.gmra.mxu1 %vm526_vm5, %v3127_v4  ;;  %v2589_v33 = vsel %vm2586_vm12, %v2575_v18, %v2577_v31 }
 0x1b5   : > { %3372 = vmatpush3.msra.mxu0 %v2321_v15  ;;  %1907 = vmatprep.mubr.f32.mxu1 %v4054_v46 }
 0x1b6   : > { %2645 = vmatprep.subr.mxu0 %v2591_v17  ;;  %3148 = vmatmul.mubr.msk.f32.gmra.mxu0 %vm526_vm5, %v3142_v16 }
 0x1b7   : > { %2157 = vmatprep.mubr.f32.mxu0 %v4054_v46 }
 0x1b8   : > { %3134 = vmatmul.mubr.msk.f32.gmra.mxu1 %vm526_vm5, %v3128_v8 }
 0x1b9   : > { %3360 = vmatprep.mubr.msk.f32.mxu1 %vm526_vm5, %v3141_v12 }
 0x1ba   : > { %3149 = vmatmul.mubr.msk.f32.gmra.mxu0 %vm526_vm5, %v3143_v19 }
 0x1bb   : > { %2163 = vmatprep.mubr.f32.mxu0 %v4054_v46 }
 0x1bc   : > { %3361 = vmatmul.mubr.msk.f32.vlgmr.msra.gmra.mxu1 %vm526_vm5, %v3142_v16 }
 0x1bd   : > { %2378 = vmatpush1.msra.mxu1 %v2322_v22  ;;  %3363 = vmatprep.mubr.msk.f32.mxu1 %vm526_vm5, %v3143_v19 }
 0x1be   : > { %2379 = vmatprep.subr.mxu1 %v2320_v24  ;;  %3150 = vmatmul.mubr.msk.f32.gmra.mxu0 %vm526_vm5, %v3144_v21 }
 0x1bf   : > { %2380 = vmatpush1.msra.mxu1 %v2319_v25  ;;  %2169 = vmatprep.mubr.f32.mxu0 %v4054_v46 }
 0x1c0   : > { %3382 = vmatprep.subr.mxu1 %v2592_v27  ;;  %3364 = vmatmul.mubr.msk.f32.gmra.mxu1 %vm526_vm5, %v3144_v21 }
 0x1c1   : > { %3366 = vmatprep.mubr.msk.f32.mxu1 %vm526_vm5, %v3145_v26 }
 0x1c2   : > { %3151 = vmatmul.mubr.msk.f32.gmra.mxu0 %vm526_vm5, %v3145_v26 }
 0x1c3   : > { %2175 = vmatprep.mubr.f32.mxu0 %v4054_v46 }
 0x1c4   : > { %3367 = vmatmul.mubr.msk.f32.gmra.mxu1 %vm526_vm5, %v3146_v29 }
 0x1c5   : > { %2413 = vmatprep.mubr.f32.mxu1 %v4054_v46 }
 0x1c6   : > { %3152 = vmatmul.mubr.msk.f32.gmra.mxu0 %vm526_vm5, %v3146_v29 }
 0x1c7   : > { %3373 = vmatprep.mubr.msk.f32.mxu0 %vm526_vm5, %v3159_v30 }
 0x1c8   : > { %3165 = vmatmul.mubr.msk.f32.vlgmr.msra.gmra.mxu1 %vm526_vm5, %v3159_v30 }
 0x1c9   : > { %3383 = vmatpush3.msra.mxu1 %v2592_v27  ;;  %2419 = vmatprep.mubr.f32.mxu1 %v4054_v46 }
 0x1ca   : > { %3384 = vmatprep.subr.mxu1 %v2589_v33  ;;  %3374 = vmatmul.mubr.msk.f32.vlgmr.msra.gmra.mxu0 %vm526_vm5, %v3160_v32 }
 0x1cb   : > { %2646 = vmatpush1.msra.mxu0 %v2590_v34  ;;  %3385 = vmatpush3.msra.mxu1 %v2589_v33 }
 0x1cc   : > { %2647 = vmatprep.subr.mxu0 %v2588_v36  ;;  %3166 = vmatmul.mubr.msk.f32.gmra.mxu1 %vm526_vm5, %v3160_v32 }
 0x1cd   : > { %2648 = vmatpush1.msra.mxu0 %v2587_v38  ;;  %3376 = vmatprep.mubr.msk.f32.mxu0 %vm526_vm5, %v3161_v35 }
 0x1ce   : > { %3377 = vmatmul.mubr.msk.f32.gmra.mxu0 %vm526_vm5, %v3162_v37  ;;  %2425 = vmatprep.mubr.f32.mxu1 %v4054_v46 }
 0x1cf   : > { %3379 = vmatprep.mubr.msk.f32.mxu0 %vm526_vm5, %v3163_v39 }
 0x1d0   : > { %3167 = vmatmul.mubr.msk.f32.gmra.mxu1 %vm526_vm5, %v3161_v35 }
 0x1d1   : > { %2431 = vmatprep.mubr.f32.mxu1 %v4054_v46 }
 0x1d2   : > { %3380 = vmatmul.mubr.msk.f32.gmra.mxu0 %vm526_vm5, %v3164_v40 }
 0x1d3   : > { %2681 = vmatprep.mubr.f32.mxu0 %v4054_v46 }
 0x1d4   : > { %3168 = vmatmul.mubr.msk.f32.gmra.mxu1 %vm526_vm5, %v3162_v37 }
 0x1d5   : > { %2437 = vmatprep.mubr.f32.mxu1 %v4054_v46 }
 0x1d6   : > { %3183 = vmatmul.mubr.msk.f32.vlgmr.msra.gmra.mxu0 %vm526_vm5, %v3177_v41 }
 0x1d7   : > { %2687 = vmatprep.mubr.f32.mxu0 %v4054_v46 }
 0x1d8   : > { %3169 = vmatmul.mubr.msk.f32.gmra.mxu1 %vm526_vm5, %v3163_v39 }
 0x1d9   : > { %2443 = vmatprep.mubr.f32.mxu1 %v4054_v46 }
 0x1da   : > { %3184 = vmatmul.mubr.msk.f32.gmra.mxu0 %vm526_vm5, %v3178_v42 }
 0x1db   : > { %2693 = vmatprep.mubr.f32.mxu0 %v4054_v46 }
 0x1dc   : > { %3170 = vmatmul.mubr.msk.f32.gmra.mxu1 %vm526_vm5, %v3164_v40 }
 0x1dd   : > { %3386 = vmatprep.mubr.msk.f32.mxu1 %vm526_vm5, %v3177_v41 }
 0x1de   : > { %3185 = vmatmul.mubr.msk.f32.gmra.mxu0 %vm526_vm5, %v3179_v0 }
 0x1df   : > { %2699 = vmatprep.mubr.f32.mxu0 %v4054_v46 }
 0x1e0   : > { %3387 = vmatmul.mubr.msk.f32.vlgmr.msra.gmra.mxu1 %vm526_vm5, %v3178_v42 }
 0x1e1   : > { %3389 = vmatprep.mubr.msk.f32.mxu1 %vm526_vm5, %v3179_v0 }
 0x1e2   : > { %3186 = vmatmul.mubr.msk.f32.gmra.mxu0 %vm526_vm5, %v3180_v43 }
 0x1e3   : > { %2705 = vmatprep.mubr.f32.mxu0 %v4054_v46 }
 0x1e4   : > { %3390 = vmatmul.mubr.msk.f32.gmra.mxu1 %vm526_vm5, %v3180_v43 }
 0x1e5   : > { %3392 = vmatprep.mubr.msk.f32.mxu1 %vm526_vm5, %v3181_v44 }
 0x1e6   : > { %3187 = vmatmul.mubr.msk.f32.gmra.mxu0 %vm526_vm5, %v3181_v44 }
 0x1e7   : > { %2711 = vmatprep.mubr.f32.mxu0 %v4054_v46 }
 0x1e8   : > { %3393 = vmatmul.mubr.msk.f32.gmra.mxu1 %vm526_vm5, %v3182_v45 }
 0x1e9   : > { %v2834_v51 = vpop.permute.xlu1 %2833 }
 0x1ea   : > { %3188 = vmatmul.mubr.msk.f32.gmra.mxu0 %vm526_vm5, %v3182_v45 }
 0x208   : > { %v611_v47 = vpop.f32.mrf.mxu0 }
 0x209   : > { %v641_v48 = vpop.f32.mrf.mxu1 }
 0x20a   : > { %v613_v49 = vpop.f32.mrf.mxu0 }
 0x20b   : > { %v643_v52 = vpop.f32.mrf.mxu1 }
 0x20d   : > { %v617_v50 = vpop.f32.mrf.mxu0 }
 0x20f   : > { %v619_v53 = vpop.f32.mrf.mxu0  ;;  %v3284_v54 = vpop.f32.mrf.mxu1 }
 0x211   : > { %v623_v55 = vpop.f32.mrf.mxu0  ;;  %v712_v56 = vpop.f32.mrf.mxu1 }
 0x213   : > { %v625_v57 = vpop.f32.mrf.mxu0  ;;  %v3287_v58 = vpop.f32.mrf.mxu1 }
 0x215   : > { %v629_v59 = vpop.f32.mrf.mxu0  ;;  %v722_v60 = vpop.f32.mrf.mxu1 }
 0x217   : > { %v631_v61 = vpop.f32.mrf.mxu0  ;;  %v3290_v62 = vpop.f32.mrf.mxu1 }
 0x219   : > { %v635_v46 = vpop.f32.mrf.mxu0  ;;  %v732_v63 = vpop.f32.mrf.mxu1 }
 0x21b   : > { %v637_v2 = vpop.f32.mrf.mxu0  ;;  %v825_v3 = vpop.f32.mrf.mxu1 }
 0x21c   : > { %v826_v4 = vadd.f32 %v825_v3, %v611_v47 }
 0x21d   : > { %v827_v5 = vpop.f32.mrf.mxu1  ;;  %v3297_v6 = vpop.f32.mrf.mxu0 }
 0x21e   : > { %v828_v7 = vadd.f32 %v827_v5, %v613_v49  ;;  %v932_v8 = vadd.f32 %v3297_v6, %v3284_v54 }
 0x21f   : > { %v831_v9 = vpop.f32.mrf.mxu1  ;;  %v926_v10 = vpop.f32.mrf.mxu0 }
 0x220   : > { %v832_v12 = vadd.f32 %v831_v9, %v617_v50  ;;  %v927_v13 = vadd.f32 %v926_v10, %v712_v56 }
 0x221   : > { %v833_v14 = vpop.f32.mrf.mxu1  ;;  %v3300_v15 = vpop.f32.mrf.mxu0 }
 0x222   : > { %v834_v16 = vadd.f32 %v833_v14, %v619_v53  ;;  %v942_v17 = vadd.f32 %v3300_v15, %v3287_v58 }
 0x223   : > { %v837_v18 = vpop.f32.mrf.mxu1  ;;  %v936_v19 = vpop.f32.mrf.mxu0 }
 0x224   : > { %v838_v20 = vadd.f32 %v837_v18, %v623_v55  ;;  %v937_v21 = vadd.f32 %v936_v19, %v722_v60 }
 0x225   : > { %v839_v22 = vpop.f32.mrf.mxu1  ;;  %v3303_v23 = vpop.f32.mrf.mxu0 }
 0x226   : > { %v840_v24 = vadd.f32 %v839_v22, %v625_v57  ;;  %v952_v25 = vadd.f32 %v3303_v23, %v3290_v62 }
 0x227   : > { %v843_v26 = vpop.f32.mrf.mxu1  ;;  %v946_v27 = vpop.f32.mrf.mxu0 }
 0x228   : > { %v844_v28 = vadd.f32 %v843_v26, %v629_v59  ;;  %v947_v29 = vadd.f32 %v946_v27, %v732_v63 }
 0x229   : > { %v845_v30 = vpop.f32.mrf.mxu1  ;;  %v1075_v31 = vpop.f32.mrf.mxu0 }
 0x22a   : > { %v846_v32 = vadd.f32 %v845_v30, %v631_v61  ;;  %v1205_v33 = vadd.f32 %v1075_v31, %v826_v4 }
 0x22b   : > { %v849_v34 = vpop.f32.mrf.mxu1  ;;  %v1077_v35 = vpop.f32.mrf.mxu0 }
 0x22c   : > { %v850_v36 = vadd.f32 %v849_v34, %v635_v46  ;;  %v1206_v37 = vadd.f32 %v1077_v35, %v828_v7 }
 0x22d   : > { %v851_v38 = vpop.f32.mrf.mxu1  ;;  %v1081_v39 = vpop.f32.mrf.mxu0 }
 0x22e   : > { %v852_v40 = vadd.f32 %v851_v38, %v637_v2  ;;  %v1208_v41 = vadd.f32 %v1081_v39, %v832_v12 }
 0x22f   : > { %v855_v42 = vpop.f32.mrf.mxu1  ;;  %v1083_v0 = vpop.f32.mrf.mxu0 }
 0x230   : > { %v856_v43 = vadd.f32 %v855_v42, %v641_v48  ;;  %v1209_v44 = vadd.f32 %v1083_v0, %v834_v16 }
 0x231   : > { %v857_v45 = vpop.f32.mrf.mxu1  ;;  %v1087_v47 = vpop.f32.mrf.mxu0 }
 0x232   : > { %v858_v49 = vadd.f32 %v857_v45, %v643_v52  ;;  %v1211_v50 = vadd.f32 %v1087_v47, %v838_v20 }
 0x233   : > { %v1089_v53 = vpop.f32.mrf.mxu0  ;;  %v3310_v54 = vpop.f32.mrf.mxu1 }
 0x234   : > { %v1212_v55 = vadd.f32 %v1089_v53, %v840_v24  ;;  %v1210_v56 = vadd.f32 %v3310_v54, %v932_v8 }
 0x235   : > { %v1093_v57 = vpop.f32.mrf.mxu0  ;;  %v1176_v58 = vpop.f32.mrf.mxu1 }
 0x236   : > { %v1214_v59 = vadd.f32 %v1093_v57, %v844_v28  ;;  %v1207_v60 = vadd.f32 %v1176_v58, %v927_v13 }
 0x237   : > { %v1095_v61 = vpop.f32.mrf.mxu0  ;;  %v3313_v62 = vpop.f32.mrf.mxu1 }
 0x238   : > { %v1215_v46 = vadd.f32 %v1095_v61, %v846_v32  ;;  %v1216_v63 = vadd.f32 %v3313_v62, %v942_v17 }
 0x239   : > { %v1099_v2 = vpop.f32.mrf.mxu0  ;;  %v1186_v3 = vpop.f32.mrf.mxu1 }
 0x23a   : > { %v1217_v48 = vadd.f32 %v1099_v2, %v850_v36  ;;  %v1213_v4 = vadd.f32 %v1186_v3, %v937_v21 }
 0x23b   : > { %v1101_v5 = vpop.f32.mrf.mxu0  ;;  %v3316_v6 = vpop.f32.mrf.mxu1 }
 0x23c   : > { %v1218_v52 = vadd.f32 %v1101_v5, %v852_v40  ;;  %v1222_v7 = vadd.f32 %v3316_v6, %v952_v25 }
 0x23d   : > { %v1105_v9 = vpop.f32.mrf.mxu0  ;;  %v1196_v10 = vpop.f32.mrf.mxu1 }
 0x23e   : > { %v1220_v12 = vadd.f32 %v1105_v9, %v856_v43  ;;  %v1219_v8 = vadd.f32 %v1196_v10, %v947_v29 }
 0x23f   : > { %v1107_v14 = vpop.f32.mrf.mxu0  ;;  %v1343_v15 = vpop.f32.mrf.mxu1 }
 0x240   : > { %v1221_v16 = vadd.f32 %v1107_v14, %v858_v49  ;;  %v1473_v13 = vadd.f32 %v1343_v15, %v1205_v33 }
 0x241   : > { %v1345_v18 = vpop.f32.mrf.mxu1  ;;  %v3323_v19 = vpop.f32.mrf.mxu0 }
 0x242   : > { %v1474_v20 = vadd.f32 %v1345_v18, %v1206_v37  ;;  %v1478_v17 = vadd.f32 %v3323_v19, %v1210_v56 }
 0x243   : > { %v1349_v22 = vpop.f32.mrf.mxu1  ;;  %v1444_v23 = vpop.f32.mrf.mxu0 }
 0x244   : > { %v1476_v24 = vadd.f32 %v1349_v22, %v1208_v41  ;;  %v1475_v21 = vadd.f32 %v1444_v23, %v1207_v60 }
 0x245   : > { %v1351_v26 = vpop.f32.mrf.mxu1 }
 0x246   : > { %v1477_v27 = vadd.f32 %v1351_v26, %v1209_v44  ;;  %v3326_v28 = vpop.f32.mrf.mxu0 }
 0x247   : > { %v1484_v25 = vadd.f32 %v3326_v28, %v1216_v63  ;;  %v1355_v30 = vpop.f32.mrf.mxu1 }
 0x248   : > { %v1479_v31 = vadd.f32 %v1355_v30, %v1211_v50  ;;  %v1454_v32 = vpop.f32.mrf.mxu0 }
 0x249   : > { %v1481_v29 = vadd.f32 %v1454_v32, %v1213_v4  ;;  %v1357_v34 = vpop.f32.mrf.mxu1 }
 0x24a   : > { %v1480_v35 = vadd.f32 %v1357_v34, %v1212_v55  ;;  %v3329_v36 = vpop.f32.mrf.mxu0 }
 0x24b   : > { %v1490_v33 = vadd.f32 %v3329_v36, %v1222_v7  ;;  %v1361_v38 = vpop.f32.mrf.mxu1 }
 0x24c   : > { %v1482_v39 = vadd.f32 %v1361_v38, %v1214_v59  ;;  %v1464_v37 = vpop.f32.mrf.mxu0 }
 0x24d   : > { %v1487_v40 = vadd.f32 %v1464_v37, %v1219_v8  ;;  %v1363_v42 = vpop.f32.mrf.mxu1 }
 0x24e   : > { %v1483_v0 = vadd.f32 %v1363_v42, %v1215_v46  ;;  %v1611_v41 = vpop.f32.mrf.mxu0 }
 0x24f   : > { %v4265_v43 = vadd.f32 %v1611_v41, %v1473_v13  ;;  %v1367_v44 = vpop.f32.mrf.mxu1 }
 0x250   : > { %v1485_v45 = vadd.f32 %v1367_v44, %v1217_v48  ;;  %v1613_v47 = vpop.f32.mrf.mxu0 }
 0x251   : > { %v4267_v49 = vadd.f32 %v1613_v47, %v1474_v20  ;;  %v1369_v50 = vpop.f32.mrf.mxu1 }
 0x252   : > { %v1486_v53 = vadd.f32 %v1369_v50, %v1218_v52  ;;  %v1617_v54 = vpop.f32.mrf.mxu0 }
 0x253   : > { %v1744_v55 = vadd.f32 %v1617_v54, %v1476_v24  ;;  %v1373_v56 = vpop.f32.mrf.mxu1 }
 0x254   : > { %v1488_v57 = vadd.f32 %v1373_v56, %v1220_v12  ;;  %v1619_v58 = vpop.f32.mrf.mxu0 }
 0x255   : > { %v1745_v59 = vadd.f32 %v1619_v58, %v1477_v27  ;;  %v1375_v60 = vpop.f32.mrf.mxu1 }
 0x256   : > { %v1489_v61 = vadd.f32 %v1375_v60, %v1221_v16  ;;  %v1623_v62 = vpop.f32.mrf.mxu0 }
 0x257   : > { %v1747_v46 = vadd.f32 %v1623_v62, %v1479_v31  ;;  %v3336_v63 = vpop.f32.mrf.mxu1 }
 0x258   : > { %v1625_v2 = vpop.f32.mrf.mxu0  ;;  %v1746_v3 = vadd.f32 %v3336_v63, %v1478_v17 }
 0x259   : > { %v1748_v4 = vadd.f32 %v1625_v2, %v1480_v35  ;;  %v1712_v48 = vpop.f32.mrf.mxu1 }
 0x25a   : > { %v1629_v5 = vpop.f32.mrf.mxu0  ;;  %v4269_v6 = vadd.f32 %v1712_v48, %v1475_v21 }
 0x25b   : > { %v4271_v7 = vadd.f32 %v1629_v5, %v1482_v39  ;;  %v3339_v52 = vpop.f32.mrf.mxu1 }
 0x25c   : > { %v1631_v9 = vpop.f32.mrf.mxu0  ;;  %v4273_v10 = vadd.f32 %v3339_v52, %v1484_v25 }
 0x25d   : > { %v4275_v12 = vadd.f32 %v1631_v9, %v1483_v0  ;;  %v1722_v8 = vpop.f32.mrf.mxu1 }
 0x25e   : > { %v1635_v14 = vpop.f32.mrf.mxu0  ;;  %v1749_v15 = vadd.f32 %v1722_v8, %v1481_v29 }
 0x25f   : > { %v4277_v16 = vadd.f32 %v1635_v14, %v1485_v45  ;;  %v3342_v13 = vpop.f32.mrf.mxu1 }
 0x260   : > { %v1637_v18 = vpop.f32.mrf.mxu0  ;;  %v1758_v19 = vadd.f32 %v3342_v13, %v1490_v33 }
 0x261   : > { %v4279_v20 = vadd.f32 %v1637_v18, %v1486_v53  ;;  %v1732_v17 = vpop.f32.mrf.mxu1 }
 0x262   : > { %v1641_v22 = vpop.f32.mrf.mxu0  ;;  %v4281_v23 = vadd.f32 %v1732_v17, %v1487_v40 }
 0x263   : > { %v1756_v24 = vadd.f32 %v1641_v22, %v1488_v57  ;;  %v4283_v21 = vpop.f32.mrf.mxu1 }
 0x264   : > { %v1643_v26 = vpop.f32.mrf.mxu0 }
 0x265   : > { %v1757_v27 = vadd.f32 %v1643_v26, %v1489_v61  ;;  %v4285_v28 = vpop.f32.mrf.mxu1 }
 0x266   : > { %v3349_v25 = vpop.f32.mrf.mxu0  ;;  %v2010_v11 = vadd.f32 %v4285_v28, %v4267_v49 }
 0x267   : > { %v4287_v30 = vadd.f32 %v3349_v25, %v1746_v3 }
 0x268   : > { %v1885_v31 = vpop.f32.mrf.mxu1  ;;  %v4289_v32 = vpop.f32.mrf.mxu0 }
 0x269   : > { %v4291_v29 = vadd.f32 %v1885_v31, %v1744_v55 }
 0x26a   : > { %v1887_v34 = vpop.f32.mrf.mxu1  ;;  %v4293_v35 = vpop.f32.mrf.mxu0 }
 0x26b   : > { %v4295_v36 = vadd.f32 %v1887_v34, %v1745_v59 }
 0x26c   : > { %v1891_v33 = vpop.f32.mrf.mxu1  ;;  %v1990_v38 = vpop.f32.mrf.mxu0 }
 0x26d   : > { %v2015_v39 = vadd.f32 %v1891_v33, %v1747_v46  ;;  %v2017_v37 = vadd.f32 %v1990_v38, %v1749_v15 }
 0x26e   : > { %v1893_v40 = vpop.f32.mrf.mxu1  ;;  %v3355_v42 = vpop.f32.mrf.mxu0 }
 0x26f   : > { %v2016_v0 = vadd.f32 %v1893_v40, %v1748_v4  ;;  %v4297_v41 = vadd.f32 %v3355_v42, %v1758_v19 }
 0x270   : > { %v1897_v44 = vpop.f32.mrf.mxu1  ;;  %v2000_v45 = vpop.f32.mrf.mxu0 }
 0x271   : > { %4447 = vst [vmem:[#allocation9_spill] sm:$0xff] %v4297_v41 }
 0x272   : > { %v1899_v47 = vpop.f32.mrf.mxu1  ;;  %v2147_v50 = vpop.f32.mrf.mxu0 }
 0x273   : > { %v2019_v49 = vadd.f32 %v1899_v47, %v4275_v12 }
 0x274   : > { %v1903_v53 = vpop.f32.mrf.mxu1  ;;  %v2149_v54 = vpop.f32.mrf.mxu0 }
 0x275   : > { %v2021_v28 = vadd.f32 %v1903_v53, %v4277_v16 }
 0x276   : > { %v1905_v55 = vpop.f32.mrf.mxu1  ;;  %v2153_v56 = vpop.f32.mrf.mxu0 }
 0x278   : > { %v1909_v57 = vpop.f32.mrf.mxu1  ;;  %v4299_v58 = vpop.f32.mrf.mxu0 }
 0x279   : > { %v4301_v59 = vadd.f32 %v1909_v57, %v1756_v24  ;;  %v2281_v12 = vadd.f32 %v4299_v58, %v4295_v36 }
 0x27a   : > { %v1911_v60 = vpop.f32.mrf.mxu1  ;;  %v2159_v61 = vpop.f32.mrf.mxu0 }
 0x27b   : > { %v4303_v62 = vadd.f32 %v1911_v60, %v1757_v27  ;;  %v4305_v46 = vadd.f32 %v2159_v61, %v2015_v39 }
 0x27c   : > { %v2161_v63 = vpop.f32.mrf.mxu0  ;;  %v4307_v2 = vpop.f32.mrf.mxu1 }
 0x27d   : > { %4448 = vst [vmem:[#allocation10_spill] sm:$0xff] %v4305_v46  ;;  %v4309_v3 = vadd.f32 %v2161_v63, %v2016_v0  ;;  %v2009_v63 = vadd.f32 %v4283_v21, %v4265_v43  ;;  %v2023_v43 = vadd.f32 %v2000_v45, %v4281_v23  ;;  %v2278_v21 = vadd.f32 %v2149_v54, %v2010_v11 }
 0x27e   : > { %v2165_v4 = vpop.f32.mrf.mxu0  ;;  %v2248_v48 = vpop.f32.mrf.mxu1 }
 0x27f   : > { %4449 = vst [vmem:[#allocation11_spill] sm:$0xff] %v4309_v3  ;;  %v2011_v3 = vadd.f32 %v4289_v32, %v4269_v6  ;;  %v2022_v6 = vadd.f32 %v1905_v55, %v4279_v20 }
 0x280   : > { %v2167_v5 = vpop.f32.mrf.mxu0  ;;  %v3365_v52 = vpop.f32.mrf.mxu1 }
 0x281   : > { %v2287_v23 = vadd.f32 %v2167_v5, %v2019_v49 }
 0x282   : > { %v2171_v9 = vpop.f32.mrf.mxu0  ;;  %v2258_v8 = vpop.f32.mrf.mxu1 }
 0x283   : > { %v4311_v14 = vadd.f32 %v2258_v8, %v2017_v37  ;;  %v2289_v16 = vadd.f32 %v2171_v9, %v2021_v28 }
 0x284   : > { %v4313_v15 = vpop.f32.mrf.mxu0  ;;  %v4315_v13 = vpop.f32.mrf.mxu1 }
 0x285   : > { %4450 = vst [vmem:[#allocation12_spill] sm:$0xff] %v4311_v14  ;;  %4451 = vst [vmem:[#allocation13_spill] sm:$0xff] %v4315_v13  ;;  %v2290_v5 = vadd.f32 %v4313_v15, %v2022_v6 }
 0x286   : > { %v4317_v18 = vpop.f32.mrf.mxu0  ;;  %v4319_v19 = vpop.f32.mrf.mxu1 }
 0x288   : > { %v4321_v17 = vpop.f32.mrf.mxu0  ;;  %v2415_v22 = vpop.f32.mrf.mxu1 }
 0x28a   : > { %v2417_v24 = vpop.f32.mrf.mxu1  ;;  %v4323_v26 = vpop.f32.mrf.mxu0 }
 0x28b   : > { %v2546_v32 = vadd.f32 %v2417_v24, %v2278_v21 }
 0x28c   : > { %v2421_v27 = vpop.f32.mrf.mxu1  ;;  %v2516_v25 = vpop.f32.mrf.mxu0 }
 0x28e   : > { %v4325_v31 = vpop.f32.mrf.mxu1  ;;  %v3378_v34 = vpop.f32.mrf.mxu0 }
 0x290   : > { %v4327_v33 = vpop.f32.mrf.mxu1  ;;  %v4329_v38 = vpop.f32.mrf.mxu0 }
 0x291   : > { %4452 = vst [vmem:[#allocation14_spill] sm:$0xff] %v4327_v33  ;;  %4453 = vst [vmem:[#allocation15_spill] sm:$0xff] %v4329_v38  ;;  %v2277_v38 = vadd.f32 %v2147_v50, %v2009_v63  ;;  %v2020_v33 = vadd.f32 %v4293_v35, %v4273_v10  ;;  %v2279_v63 = vadd.f32 %v2248_v48, %v2011_v3 }
 0x292   : > { %v4331_v39 = vpop.f32.mrf.mxu1  ;;  %v4333_v37 = vpop.f32.mrf.mxu0  ;;  %v2282_v48 = vadd.f32 %v4307_v2, %v4287_v30 }
 0x293   : > { %4454 = vst [vmem:[#allocation16_spill] sm:$0xff] %v4331_v39  ;;  %4455 = vst [vmem:[#allocation17_spill] sm:$0xff] %v4333_v37  ;;  %v2018_v37 = vadd.f32 %v1897_v44, %v4271_v7  ;;  %v2545_v46 = vadd.f32 %v2415_v22, %v2277_v38  ;;  %v2280_v7 = vadd.f32 %v2153_v56, %v4291_v29  ;;  %v2839_v22 = vpop.permute.xlu1 %2838 }
 0x294   : > { %v2433_v40 = vpop.f32.mrf.mxu1  ;;  %v4335_v42 = vpop.f32.mrf.mxu0  ;;  %v2288_v44 = vadd.f32 %v3365_v52, %v2020_v33  ;;  %v2547_v45 = vadd.f32 %v2516_v25, %v2279_v63  ;;  %v2291_v38 = vadd.f32 %v4319_v19, %v2023_v43  ;;  %v2550_v21 = vadd.f32 %v4323_v26, %v2282_v48 }
 0x295   : > { %v2286_v50 = vadd.f32 %v2165_v4, %v2018_v37  ;;  %v2548_v47 = vadd.f32 %v2421_v27, %v2280_v7  ;;  %v2849_v4 = vpop.permute.xlu0 %2848  ;;  %v2293_v48 = vadd.f32 %v4321_v17, %v4303_v62 }
 0x296   : > { %v2435_v0 = vpop.f32.mrf.mxu1  ;;  %v2683_v57 = vpop.f32.mrf.mxu0  ;;  %v2556_v55 = vadd.f32 %v3378_v34, %v2288_v44  ;;  %v2549_v34 = vadd.f32 %v4325_v31, %v2281_v12  ;;  %v2559_v6 = vadd.f32 %v4335_v42, %v2291_v38 }
 0x297   : > { %v2813_v10 = vadd.f32 %v2683_v57, %v2545_v46  ;;  %v2554_v54 = vadd.f32 %v2433_v40, %v2286_v50  ;;  %v2555_v29 = vadd.f32 %v2435_v0, %v2287_v23  ;;  %v2854_v30 = vpop.permute.xlu1 %2853 }
 0x298   : > { %v2439_v60 = vpop.f32.mrf.mxu1  ;;  %v2685_v61 = vpop.f32.mrf.mxu0 }
 0x299   : > { %v2814_v53 = vadd.f32 %v2685_v61, %v2546_v32  ;;  %v2861_v52 = vadd.f32 %v2834_v51, %v2813_v10  ;;  %v2557_v36 = vadd.f32 %v2439_v60, %v2289_v16 }
 0x29a   : > { %v4339_v8 = vpop.f32.mrf.mxu1  ;;  %v2689_v1 = vpop.f32.mrf.mxu0 }
 0x29b   : > { %v2816_v24 = vadd.f32 %v2689_v1, %v2548_v47  ;;  %v2862_v37 = vadd.f32 %v2834_v51, %v2814_v53  ;;  %v2558_v60 = vadd.f32 %v4339_v8, %v2290_v5 }
 0x29c   : > { %v4343_v14 = vpop.f32.mrf.mxu1  ;;  %v2691_v39 = vpop.f32.mrf.mxu0 }
 0x29d   : > { %v2864_v49 = vadd.f32 %v2839_v22, %v2816_v24  ;;  %v2817_v28 = vadd.f32 %v2691_v39, %v2549_v34  ;;  %v4456_v24 = vld [vmem:[#allocation9_spill] sm:$0xff] }
 0x29e   : > { %v4351_v13 = vpop.f32.mrf.mxu1  ;;  %v4353_v41 = vpop.f32.mrf.mxu0 }
 0x29f   : > { %v2865_v26 = vadd.f32 %v2839_v22, %v2817_v28  ;;  %v2561_v38 = vadd.f32 %v4351_v13, %v2293_v48 }
 0x2a0   : > { %v4359_v35 = vpop.f32.mrf.mxu0  ;;  %v3388_v11 = vpop.f32.mrf.mxu1 }
 0x2a1   : > { %v2818_v7 = vadd.f32 %v3388_v11, %v2550_v21  ;;  %v2844_v21 = vpop.permute.xlu1 %2843 }
 0x2a2   : > { %v2701_v3 = vpop.f32.mrf.mxu0  ;;  %v2784_v20 = vpop.f32.mrf.mxu1 }
 0x2a3   : > { %v2822_v56 = vadd.f32 %v2701_v3, %v2554_v54  ;;  %v2815_v46 = vadd.f32 %v2784_v20, %v2547_v45  ;;  %v2866_v39 = vadd.f32 %v2839_v22, %v2818_v7 }
 0x2a4   : > { %v2703_v25 = vpop.f32.mrf.mxu0  ;;  %v3391_v33 = vpop.f32.mrf.mxu1 }
 0x2a5   : > { %v2823_v58 = vadd.f32 %v2703_v25, %v2555_v29  ;;  %v2870_v9 = vadd.f32 %v2849_v4, %v2822_v56  ;;  %v2824_v27 = vadd.f32 %v3391_v33, %v2556_v55  ;;  %v2863_v40 = vadd.f32 %v2834_v51, %v2815_v46  ;;  %v4457_v25 = vld [vmem:[#allocation13_spill] sm:$0xff] }
 0x2a6   : > { %v2707_v0 = vpop.f32.mrf.mxu0  ;;  %v4368_v57 = vpop.f32.mrf.mxu1  ;;  %v2294_v33 = vadd.f32 %v4457_v25, %v4456_v24 }
 0x2a7   : > { %v2871_v2 = vadd.f32 %v2849_v4, %v2823_v58  ;;  %v2879_v15 = vadd.f32 %v2870_v9, %v2861_v52  ;;  %v2872_v61 = vadd.f32 %v2849_v4, %v2824_v27  ;;  %v2825_v1 = vadd.f32 %v2707_v0, %v2557_v36  ;;  %v4458_v58 = vld [vmem:[#allocation10_spill] sm:$0xff] }
 0x2a8   : > { %v2709_v50 = vpop.f32.mrf.mxu0  ;;  %v3394_v19 = vpop.f32.mrf.mxu1  ;;  %v2292_v4 = vadd.f32 %v4317_v18, %v4301_v59  ;;  %v4459_v9 = vld [vmem:[#allocation14_spill] sm:$0xff]  ;;  %v4461_v18 = vld [vmem:[#allocation11_spill] sm:$0xff] }
 0x2a9   : > { %v2880_v43 = vadd.f32 %v2871_v2, %v2862_v37  ;;  %v3195_v31 = vmul.f32 -1.442695, %v2879_v15  ;;  %v2881_v63 = vadd.f32 %v2872_v61, %v2863_v40  ;;  %v2873_v51 = vadd.f32 %v2854_v30, %v2825_v1  ;;  %v4460_v40 = vld [vmem:[#allocation17_spill] sm:$0xff]  ;;  %v4463_v15 = vld [vmem:[#allocation12_spill] sm:$0xff]  ;;  %v4464_v61 = vld [vmem:[#allocation15_spill] sm:$0xff] }
 0x2aa   : > { %v2826_v32 = vadd.f32 %v2709_v50, %v2558_v60  ;;  %v2804_v10 = vpop.f32.mrf.mxu1  ;;  %v2713_v22 = vpop.f32.mrf.mxu0  ;;  %v2560_v5 = vadd.f32 %v4343_v14, %v2292_v4  ;;  %v2551_v27 = vadd.f32 %v4459_v9, %v4458_v58  ;;  %v2562_v0 = vadd.f32 %v4460_v40, %v2294_v33  ;;  %v4467_v4 = vld [vmem:[#allocation7_spill] sm:$0xff] }
 0x2ab   : > { %3483 = vpow2.f32 %v3195_v31  ;;  %v3196_v23 = vmul.f32 -1.442695, %v2880_v43  ;;  %v3197_v44 = vmul.f32 -1.442695, %v2881_v63  ;;  %v2900_v45 = vadd.f32 %v2873_v51, %v2864_v49  ;;  %v2859_v49 = vpop.permute.xlu0 %2858 }
 0x2ac   : > { %v2874_v54 = vadd.f32 %v2854_v30, %v2826_v32  ;;  %v2827_v8 = vadd.f32 %v2804_v10, %v2559_v6  ;;  %v2715_v36 = vpop.f32.mrf.mxu0  ;;  %v2828_v34 = vadd.f32 %v2713_v22, %v2560_v5  ;;  %v2819_v14 = vadd.f32 %v4353_v41, %v2551_v27 }
 0x2ad   : > { %3485 = vpow2.f32 %v3196_v23  ;;  %v3198_v53 = vmul.f32 -1.442695, %v2900_v45  ;;  %v2829_v2 = vadd.f32 %v2715_v36, %v2561_v38  ;;  %v2553_v1 = vadd.f32 %v4464_v61, %v4463_v15 }
 0x2ae   : > { %3487 = vpow2.f32 %v3197_v44  ;;  %v2901_v12 = vadd.f32 %v2874_v54, %v2865_v26  ;;  %v2875_v16 = vadd.f32 %v2854_v30, %v2827_v8  ;;  %v4462_v30 = vld [vmem:[#allocation16_spill] sm:$0xff]  ;;  %v2830_v60 = vadd.f32 %v3394_v19, %v2562_v0 }
 0x2af   : > { %3489 = vpow2.f32 %v3198_v53  ;;  %v2552_v62 = vadd.f32 %v4462_v30, %v4461_v18  ;;  %v2876_v50 = vadd.f32 %v2859_v49, %v2828_v34  ;;  %v2821_v31 = vadd.f32 %v4368_v57, %v2553_v1 }
 0x2b0   : > { %v2902_v47 = vadd.f32 %v2875_v16, %v2866_v39  ;;  %v3199_v3 = vmul.f32 -1.442695, %v2901_v12  ;;  %v2867_v51 = vadd.f32 %v2844_v21, %v2819_v14  ;;  %v2877_v41 = vadd.f32 %v2859_v49, %v2829_v2 }
 0x2b1   : > { %v2820_v13 = vadd.f32 %v4359_v35, %v2552_v62  ;;  %v2878_v32 = vadd.f32 %v2859_v49, %v2830_v60  ;;  %v2869_v45 = vadd.f32 %v2844_v21, %v2821_v31 }
 0x2b2   : > { %v3200_v20 = vmul.f32 -1.442695, %v2902_v47  ;;  %3491 = vpow2.f32 %v3199_v3  ;;  %v4465_v47 = vld [vmem:[#allocation8_spill] sm:$0xff] }
 0x2b3   : > { %v2868_v23 = vadd.f32 %v2844_v21, %v2820_v13 }
 0x2b4   : > { %3493 = vpow2.f32 %v3200_v20 }
 0x2b8   : > { %v3484_v42 = vpop.eup %3483 }
 0x2b9   : > { %v2891_v11 = vadd.f32 1.0, %v3484_v42 }
 0x2ba   : > { %v3486_v55 = vpop.eup %3485 }
 0x2bb   : > { %v3488_v29 = vpop.eup %3487  ;;  %v2892_v56 = vadd.f32 1.0, %v3486_v55  ;;  %3495 = vrcp.f32 %v2891_v11 }
 0x2bc   : > { %v2893_v46 = vadd.f32 1.0, %v3488_v29  ;;  %v3490_v52 = vpop.eup %3489  ;;  %v4466_v29 = vld [vmem:[#allocation6_spill] sm:$0xff] }
 0x2bd   : > { %3497 = vrcp.f32 %v2892_v56  ;;  %v2912_v17 = vadd.f32 1.0, %v3490_v52 }
 0x2be   : > { %3499 = vrcp.f32 %v2893_v46 }
 0x2bf   : > { %v3492_v37 = vpop.eup %3491  ;;  %3501 = vrcp.f32 %v2912_v17 }
 0x2c0   : > { %v2913_v28 = vadd.f32 1.0, %v3492_v37 }
 0x2c1   : > { %v3494_v59 = vpop.eup %3493 }
 0x2c2   : > { %v2914_v63 = vadd.f32 1.0, %v3494_v59  ;;  %3503 = vrcp.f32 %v2913_v28 }
 0x2c4   : > { %3505 = vrcp.f32 %v2914_v63 }
 0x2c8   : > { %v3496_v43 = vpop.eup %3495 }
 0x2c9   : > { %v2921_v6 = vmul.f32 %v3496_v43, %v2876_v50 }
 0x2ca   : > { %v3498_v7 = vpop.eup %3497 }
 0x2cb   : > { %v3500_v10 = vpop.eup %3499  ;;  %v2924_v19 = vadd.f32 %v2921_v6, %v2867_v51  ;;  %v2922_v44 = vmul.f32 %v3498_v7, %v2877_v41 }
 0x2cc   : > { %v2923_v35 = vmul.f32 %v3500_v10, %v2878_v32  ;;  %v3502_v54 = vpop.eup %3501 }
 0x2cd   : > { %3507 = vtanh.f32 %v2924_v19  ;;  %v2925_v26 = vadd.f32 %v2922_v44, %v2868_v23  ;;  %v2933_v12 = vsub.f32 1.0, %v3502_v54  ;;  %v2930_v53 = vmul.f32 %v3502_v54, %v4465_v47 }
 0x2ce   : > { %v2926_v57 = vadd.f32 %v2923_v35, %v2869_v45 }
 0x2cf   : > { %3509 = vtanh.f32 %v2925_v26  ;;  %v3504_v8 = vpop.eup %3503 }
 0x2d0   : > { %3511 = vtanh.f32 %v2926_v57  ;;  %v2934_v3 = vsub.f32 1.0, %v3504_v8  ;;  %v2931_v56 = vmul.f32 %v3504_v8, %v4466_v29 }
 0x2d1   : > { %v3506_v39 = vpop.eup %3505 }
 0x2d2   : > { %v2935_v11 = vsub.f32 1.0, %v3506_v39  ;;  %v2932_v48 = vmul.f32 %v3506_v39, %v4467_v4 }
 0x2da   : > { %v3508_v16 = vpop.eup %3507 }
 0x2db   : > { %v2936_v20 = vmul.f32 %v3508_v16, %v2933_v12 }
 0x2dc   : > { %v3510_v42 = vpop.eup %3509 }
 0x2dd   : > { %v3512_v55 = vpop.eup %3511  ;;  %v2937_v46 = vmul.f32 %v3510_v42, %v2934_v3  ;;  %v2939_v22 = vadd.f32 %v2936_v20, %v2930_v53 }
 0x2de   : > { %v2938_v5 = vmul.f32 %v3512_v55, %v2935_v11 }
 0x2df   : > { %v2940_v52 = vadd.f32 %v2937_v46, %v2931_v56  ;;  %2942 = vst [vmem:[%s205_s30] sm:$0xff] %v2939_v22 }
 0x2e0   : > { %v2941_v24 = vadd.f32 %v2938_v5, %v2932_v48 }
 0x2e1   : > { %2943 = vst [vmem:[%s205_s30 + $0x8] sm:$0xff] %v2940_v52 }
 0x2e2   : > { %2944 = vst [vmem:[%s205_s30 + $0x10] sm:$0xff] %v2941_v24 }
 0x2e3   : > { %3527 = shalt.err (!%p3524_p3)
}
 0x2e4   : > { %s3528_s13 = scalar_lea.hbm %s4399_s8, 384  ;;  %s3532_s22 = scalar_lea.hbm %s4438_s4, 768 }
 0x2e5   : > { %p3529_p4 = scmp.ne.s32.totalorder %s4399_s8, %s3528_s13  ;;  %p3533_p9 = scmp.lt.s32.totalorder %s4399_s8, %s4438_s4 }
 0x2e6   : > { %p3534_p10 = scmp.lt.s32.totalorder %s3532_s22, %s3528_s13 }
 0x2e7   : > { %p3530_p7 = pnand %p3529_p4, %p3666_p5 }
 0x2e8   : > { %p3535_p11 = por %p3534_p10, %p3533_p9 }
 0x2e9   : > { %p3531_p8 = pneg %p3530_p7 }
 0x2eb   : > { %p3536_p12 = pnand %p3535_p11, %p3531_p8 }
 0x2ed   : > { %3539 = shalt.err (!%p3536_p12)
}
 0x2ee   : > { %3401 = dma.vmem_to_hbm [thread:$0]  (%p3666_p5), %s2961_s5, 384, %s4399_s8, %s2946_s19  }
 0x2ef PF: > { %p3407_p13 = scmp.ge.s32.totalorder %s3574_s18, 2  ;;  %s2972_s28 = sand.u32 1, %s3562_s15  }
 0x2f0   : > { %s2973_s29 = scalar_lea.sflag [#allocation4], %s2972_s28 }
 0x2f1   : > { %p3404_p0 = pnand %p3407_p13, %p3670_p6 }
 0x2f3   : > { %p3405_p1 = pneg %p3404_p0 }
 0x2f5   : > { %3557 = dma.done.wait (%p3405_p1), %s2973_s29, 384  }
 0x2f6   : > { %3559 = vsyncadd (%p3405_p1), %s2973_s29, 4294966912  ;;  %p14_p2 = scmp.ge.s32.totalorder %s3653_s21, 4   ;;  %s4468_s15 = smov %s3566_s16 }
 0x2f7   : > { %s4469_s16 = smov %s3570_s17  ;;  %s4470_s17 = smov %s3664_s24 }
 0x2f8   : > { %s4471_s18 = smov %s3653_s21  ;;  %16 = sbr.rel (!%p14_p2) target bundleno = 3 (0x3), region = 82 }
 0x2fd   :  { %2978 = vsyncpa [#allocation4], 1 }
 0x2fe   :  { %2980 = vsyncpa [#allocation4 + $0x1], 1 }

</bundles_post_ra>
